<compile_context>
chip_gen: v7x
topology: tpu7x:2x2x1
jax: 0.10.0
libtpu: 0.0.40
codegen_flags: <defaults>
</compile_context>

<pallas_src>
import math

import jax
import jax.numpy as jnp
from jax.experimental import pallas as pl
from jax.experimental.pallas import tpu as pltpu


_ROW_CHUNK = 512  # sub-chunk rows inside a large batch tile (bounds vreg live ranges)


def qfunction_kernel(obs_ref, act_ref, w1_ref, b1_ref, w2_ref, b2_ref,
                     w3_ref, b3_ref, out_ref, xcat_ref):
    tb = out_ref.shape[1]
    obs_dim = obs_ref.shape[1]
    act_dim = act_ref.shape[1]
    d = obs_dim + act_dim
    d_pad = xcat_ref.shape[1]

    # ---- In-kernel concat (replaces torch.cat + HBM round trip) + bf16 cast.
    xcat_ref[:, :obs_dim] = obs_ref[...].astype(xcat_ref.dtype)
    xcat_ref[:, obs_dim:d] = act_ref[...].astype(xcat_ref.dtype)
    if d_pad > d:
        # Zero the lane padding so the K-padded matmul is exact
        # (the padded W1 rows are zero as well).
        xcat_ref[:, d:] = jnp.zeros((tb, d_pad - d), xcat_ref.dtype)

    b3 = b3_ref[0]  # folded final bias, scalar read from SMEM

    def mlp_rows(r0, rows):
        # ---- Layer 1: single fused K-padded bf16 MXU matmul, f32 accumulate.
        x = xcat_ref[r0:r0 + rows, :]                               # bf16 (rows, d_pad)
        h1 = jnp.dot(x, w1_ref[...],
                     preferred_element_type=jnp.float32) + b1_ref[...]
        h1 = jnp.maximum(h1, 0.0)                                   # ReLU, f32 epilogue

        # ---- Layer 2: bf16 MXU matmul, f32 accumulate.
        h2 = jnp.dot(h1.astype(w2_ref.dtype), w2_ref[...],
                     preferred_element_type=jnp.float32) + b2_ref[...]
        h2 = jnp.maximum(h2, 0.0)                                   # f32 (rows, H)

        # ---- Layer 3: (H, 1) head as VPU multiply + lane reduce (+ folded b3).
        q = jnp.sum(h2 * w3_ref[...], axis=-1) + b3                 # f32 (rows,)

        # Lane-dense store into the (1, tb) output slab.
        out_ref[:, r0:r0 + rows] = jax.lax.broadcast_in_dim(
            q, (1, rows), (1,)).astype(out_ref.dtype)

    if tb <= _ROW_CHUNK:
        mlp_rows(0, tb)
    else:
        # Large single tile: static sub-chunking keeps the f32 intermediates small.
        r0 = 0
        while r0 < tb:
            rows = min(_ROW_CHUNK, tb - r0)
            mlp_rows(r0, rows)
            r0 += rows


def _pick_batch_tile(B):
    # Small/medium B: one grid step — each extra step costs ~600 cycles and the
    # whole working set fits VMEM anyway, so pipelining hides nothing.
    if B <= 2048:
        return B
    # Large B: lane-aligned tiles (unmasked output stores) + pipelining /
    # megacore sharding across batch tiles.
    for t in (2048, 1024, 512, 256, 128):
        if B % t == 0:
            return t
    return B  # nothing divides: fall back to a single full-dim tile (always legal)


def qfunction_forward(obs, action, params, *, batch_tile=None):
    assert obs.shape[0] == action.shape[0]
    B, obs_dim = obs.shape
    act_dim = action.shape[1]
    w1p, b1, w2, b2, w3_row, b3 = params
    d_pad, H = w1p.shape

    tb = batch_tile or _pick_batch_tile(B)
    assert B % tb == 0
    n_tiles = B // tb
    rep = lambda i: (0, 0)  # weights/biases replicated across the batch grid
    # Grid-invariant operands: single-buffer them once there is a real grid.
    wkw = dict(pipeline_mode=pl.Buffered(1)) if n_tiles > 1 else {}

    out = pl.pallas_call(
        qfunction_kernel,
        out_shape=jax.ShapeDtypeStruct((1, B), jnp.float32),
        grid_spec=pltpu.PrefetchScalarGridSpec(
            num_scalar_prefetch=0,
            grid=(n_tiles,),
            in_specs=[
                pl.BlockSpec((tb, obs_dim), lambda i: (i, 0)),      # obs tile (f32)
                pl.BlockSpec((tb, act_dim), lambda i: (i, 0)),      # action tile (f32)
                pl.BlockSpec((d_pad, H), rep, **wkw),               # W1 (K-padded, bf16)
                pl.BlockSpec((1, H), rep, **wkw),                   # b1 (f32)
                pl.BlockSpec((H, H), rep, **wkw),                   # W2 (bf16)
                pl.BlockSpec((1, H), rep, **wkw),                   # b2 (f32)
                pl.BlockSpec((1, H), rep, **wkw),                   # W3 row (f32)
                pl.BlockSpec(memory_space=pltpu.MemorySpace.SMEM),  # b3 scalar (f32)
            ],
            # Lane-dense output: (1, B) slab, each grid step owns a tb-lane window.
            out_specs=pl.BlockSpec((1, tb), lambda i: (0, i)),
            scratch_shapes=[pltpu.VMEM((tb, d_pad), jnp.bfloat16)],  # concat buffer
        ),
        compiler_params=pltpu.CompilerParams(
            dimension_semantics=("parallel",)),
    )(obs, action, w1p, b1, w2, b2, w3_row, b3)

    # (1, B) lane-dense slab -> (B, 1) column to match nn.Module output shape.
    return out.reshape(B, 1)


def qfunction_ref(obs, action, params):
    """Pure-JAX reference mirroring the kernel math (bf16 matmuls, f32 accum)."""
    w1p, b1, w2, b2, w3_row, b3 = params
    d = obs.shape[1] + action.shape[1]
    x = jnp.concatenate([obs, action], axis=1).astype(jnp.bfloat16)
    h1 = jnp.maximum(
        jnp.dot(x, w1p[:d], preferred_element_type=jnp.float32) + b1, 0.0)
    h2 = jnp.maximum(
        jnp.dot(h1.astype(jnp.bfloat16), w2,
                preferred_element_type=jnp.float32) + b2, 0.0)
    return jnp.sum(h2 * w3_row, axis=-1, keepdims=True) + b3[0]


def init_params(key, obs_dim, action_dim, hidden_dim):
    """PyTorch nn.Linear-style init (U(-1/sqrt(fan_in), +)), kernel-friendly layout."""
    d_in = obs_dim + action_dim
    d_pad = ((d_in + 127) // 128) * 128
    ks = jax.random.split(key, 6)

    def uniform(k, shape, fan_in):
        bound = 1.0 / math.sqrt(fan_in)
        return jax.random.uniform(k, shape, jnp.float32, -bound, bound)

    w1 = uniform(ks[0], (d_in, hidden_dim), d_in)
    b1 = uniform(ks[1], (1, hidden_dim), d_in)
    w2 = uniform(ks[2], (hidden_dim, hidden_dim), hidden_dim)
    b2 = uniform(ks[3], (1, hidden_dim), hidden_dim)
    w3 = uniform(ks[4], (hidden_dim, 1), hidden_dim)
    b3 = uniform(ks[5], (1,), hidden_dim)

    # Zero-K-pad W1 to a lane-aligned contraction dim: the padded rows multiply
    # the zeroed padding lanes of the in-kernel concat, contributing nothing,
    # and layer 1 becomes a single MXU matmul (no torch.cat, no split matmuls).
    w1p = jnp.zeros((d_pad, hidden_dim), jnp.float32).at[:d_in].set(w1)
    return (w1p.astype(jnp.bfloat16),          # (d_pad, H) bf16
            b1,                                # (1, H) f32
            w2.astype(jnp.bfloat16),           # (H, H) bf16
            b2,                                # (1, H) f32
            jnp.transpose(w3),                 # (1, H) f32 — VPU-reduce head
            b3)                                # (1,)   f32 — SMEM scalar


if __name__ == "__main__":
    # TODO(synk): fuse SAC's twin critics (stack both W2 into (H, 2H) and both
    # W3 rows) so layer 2 fills the 256-wide v6e/v7x MXU; kept single-critic
    # here to match the QFunction module spec.
    obs_dim, action_dim, hidden_dim = 32, 8, 128
    B = 256

    key = jax.random.PRNGKey(0)
    k_obs, k_act, k_par = jax.random.split(key, 3)
    obs = jax.random.normal(k_obs, (B, obs_dim), jnp.float32)
    action = jax.random.normal(k_act, (B, action_dim), jnp.float32)
    params = init_params(k_par, obs_dim, action_dim, hidden_dim)

    q = qfunction_forward(obs, action, params)
    q = jax.block_until_ready(q)

    ref = qfunction_ref(obs, action, params)
    assert q.shape == (B, 1), q.shape
    assert bool(jnp.all(jnp.isfinite(q))), "non-finite output"
    assert jnp.allclose(q, ref, atol=5e-3, rtol=5e-3), "mismatch vs reference"
    print("KERNEL_OK")
</pallas_src>

<mosaic_0001>
module attributes {stable_mosaic.version = 11 : i64} {
  func.func @qfunction_kernel(%arg0: i32, %arg1: memref<256x32xf32, #tpu.memory_space<vmem>>, %arg2: memref<256x8xf32, #tpu.memory_space<vmem>>, %arg3: memref<128x128xbf16, #tpu.memory_space<vmem>>, %arg4: memref<1x128xf32, #tpu.memory_space<vmem>>, %arg5: memref<128x128xbf16, #tpu.memory_space<vmem>>, %arg6: memref<1x128xf32, #tpu.memory_space<vmem>>, %arg7: memref<1x128xf32, #tpu.memory_space<vmem>>, %arg8: memref<1xf32, #tpu.memory_space<smem>>, %arg9: memref<1x256xf32, #tpu.memory_space<vmem>>, %arg10: memref<256x128xbf16, #tpu.memory_space<vmem>>) attributes {dimension_semantics = [#tpu.dimension_semantics<parallel>], iteration_bounds = array<i64: 1>, scalar_prefetch = 0 : i64, scratch_operands = 1 : i64, tpu.core_type = #tpu.core_type<tc>, window_params = [{transform_indices = @transform_0, window_bounds = array<i64: 256, 32>}, {transform_indices = @transform_1, window_bounds = array<i64: 256, 8>}, {pipeline_mode = #tpu.pipeline_mode<synchronous>, transform_indices = @transform_2, window_bounds = array<i64: 128, 128>}, {pipeline_mode = #tpu.pipeline_mode<synchronous>, transform_indices = @transform_3, window_bounds = array<i64: 1, 128>}, {pipeline_mode = #tpu.pipeline_mode<synchronous>, transform_indices = @transform_4, window_bounds = array<i64: 128, 128>}, {pipeline_mode = #tpu.pipeline_mode<synchronous>, transform_indices = @transform_5, window_bounds = array<i64: 1, 128>}, {pipeline_mode = #tpu.pipeline_mode<synchronous>, transform_indices = @transform_6, window_bounds = array<i64: 1, 128>}, {transform_indices = @transform_7, window_bounds = array<i64: 1>}, {transform_indices = @transform_8, window_bounds = array<i64: 1, 256>}]} {
    %c0 = arith.constant 0 : index
    %c0_0 = arith.constant 0 : index
    %0 = vector.load %arg1[%c0, %c0_0] : memref<256x32xf32, #tpu.memory_space<vmem>>, vector<256x32xf32>
    %1 = arith.truncf %0 : vector<256x32xf32> to vector<256x32xbf16>
    %c0_1 = arith.constant 0 : index
    %c0_2 = arith.constant 0 : index
    %2 = vector.load %arg10[%c0_1, %c0_2] : memref<256x128xbf16, #tpu.memory_space<vmem>>, vector<256x32xbf16>
    tpu.vector_store %arg10[%c0_1, %c0_2], %1 {strides = array<i32>} : memref<256x128xbf16, #tpu.memory_space<vmem>>, vector<256x32xbf16>,
    %c0_3 = arith.constant 0 : index
    %c0_4 = arith.constant 0 : index
    %3 = vector.load %arg2[%c0_3, %c0_4] : memref<256x8xf32, #tpu.memory_space<vmem>>, vector<256x8xf32>
    %4 = arith.truncf %3 : vector<256x8xf32> to vector<256x8xbf16>
    %c0_5 = arith.constant 0 : index
    %c32 = arith.constant 32 : index
    %5 = vector.load %arg10[%c0_5, %c32] : memref<256x128xbf16, #tpu.memory_space<vmem>>, vector<256x8xbf16>
    tpu.vector_store %arg10[%c0_5, %c32], %4 {strides = array<i32>} : memref<256x128xbf16, #tpu.memory_space<vmem>>, vector<256x8xbf16>,
    %cst = arith.constant 0.000000e+00 : bf16
    %6 = vector.broadcast %cst : bf16 to vector<256x88xbf16>
    %c0_6 = arith.constant 0 : index
    %c40 = arith.constant 40 : index
    %7 = vector.load %arg10[%c0_6, %c40] : memref<256x128xbf16, #tpu.memory_space<vmem>>, vector<256x88xbf16>
    tpu.vector_store %arg10[%c0_6, %c40], %6 {strides = array<i32>} : memref<256x128xbf16, #tpu.memory_space<vmem>>, vector<256x88xbf16>,
    %c0_7 = arith.constant 0 : index
    %8 = memref.load %arg8[%c0_7] : memref<1xf32, #tpu.memory_space<smem>>
    %c0_8 = arith.constant 0 : index
    %c0_9 = arith.constant 0 : index
    %9 = vector.load %arg10[%c0_8, %c0_9] : memref<256x128xbf16, #tpu.memory_space<vmem>>, vector<256x128xbf16>
    %c0_10 = arith.constant 0 : index
    %c0_11 = arith.constant 0 : index
    %10 = vector.load %arg3[%c0_10, %c0_11] : memref<128x128xbf16, #tpu.memory_space<vmem>>, vector<128x128xbf16>
    %cst_12 = arith.constant dense<0.000000e+00> : vector<256x128xf32>
    %11 = tpu.matmul %9, %10, %cst_12 {dimension_numbers = #tpu.dot_dimension_numbers<[1], [0], [0], [1], [0, 0, 1, 1], [], []>} : vector<256x128xbf16>, vector<128x128xbf16>, vector<256x128xf32> -> vector<256x128xf32>
    %c0_13 = arith.constant 0 : index
    %c0_14 = arith.constant 0 : index
    %12 = vector.load %arg4[%c0_13, %c0_14] : memref<1x128xf32, #tpu.memory_space<vmem>>, vector<1x128xf32>
    %13 = vector.broadcast %12 : vector<1x128xf32> to vector<256x128xf32>
    %14 = arith.addf %11, %13 : vector<256x128xf32>
    %cst_15 = arith.constant 0.000000e+00 : f32
    %15 = vector.broadcast %cst_15 : f32 to vector<256x128xf32>
    %16 = arith.maximumf %14, %15 : vector<256x128xf32>
    %17 = arith.truncf %16 : vector<256x128xf32> to vector<256x128xbf16>
    %c0_16 = arith.constant 0 : index
    %c0_17 = arith.constant 0 : index
    %18 = vector.load %arg5[%c0_16, %c0_17] : memref<128x128xbf16, #tpu.memory_space<vmem>>, vector<128x128xbf16>
    %cst_18 = arith.constant dense<0.000000e+00> : vector<256x128xf32>
    %19 = tpu.matmul %17, %18, %cst_18 {dimension_numbers = #tpu.dot_dimension_numbers<[1], [0], [0], [1], [0, 0, 1, 1], [], []>} : vector<256x128xbf16>, vector<128x128xbf16>, vector<256x128xf32> -> vector<256x128xf32>
    %c0_19 = arith.constant 0 : index
    %c0_20 = arith.constant 0 : index
    %20 = vector.load %arg6[%c0_19, %c0_20] : memref<1x128xf32, #tpu.memory_space<vmem>>, vector<1x128xf32>
    %21 = vector.broadcast %20 : vector<1x128xf32> to vector<256x128xf32>
    %22 = arith.addf %19, %21 : vector<256x128xf32>
    %cst_21 = arith.constant 0.000000e+00 : f32
    %23 = vector.broadcast %cst_21 : f32 to vector<256x128xf32>
    %24 = arith.maximumf %22, %23 : vector<256x128xf32>
    %c0_22 = arith.constant 0 : index
    %c0_23 = arith.constant 0 : index
    %25 = vector.load %arg7[%c0_22, %c0_23] : memref<1x128xf32, #tpu.memory_space<vmem>>, vector<1x128xf32>
    %26 = vector.broadcast %25 : vector<1x128xf32> to vector<256x128xf32>
    %27 = arith.mulf %24, %26 : vector<256x128xf32>
    %cst_24 = arith.constant dense<0.000000e+00> : vector<256xf32>
    %28 = vector.multi_reduction <add>, %27, %cst_24 [1] : vector<256x128xf32> to vector<256xf32>
    %29 = vector.broadcast %8 : f32 to vector<256xf32>
    %30 = arith.addf %28, %29 : vector<256xf32>
    %31 = vector.shape_cast %30 : vector<256xf32> to vector<1x256xf32>
    %c0_25 = arith.constant 0 : index
    %c0_26 = arith.constant 0 : index
    %32 = vector.load %arg9[%c0_25, %c0_26] : memref<1x256xf32, #tpu.memory_space<vmem>>, vector<1x256xf32>
    tpu.vector_store %arg9[%c0_25, %c0_26], %31 {strides = array<i32>} : memref<1x256xf32, #tpu.memory_space<vmem>>, vector<1x256xf32>,
    return
  }
  func.func @transform_0(%arg0: i32) -> (i32, i32) {
    %c0_i32 = arith.constant 0 : i32
    %c0_i32_0 = arith.constant 0 : i32
    return %arg0, %c0_i32 : i32, i32
  }
  func.func @transform_1(%arg0: i32) -> (i32, i32) {
    %c0_i32 = arith.constant 0 : i32
    %c0_i32_0 = arith.constant 0 : i32
    return %arg0, %c0_i32 : i32, i32
  }
  func.func @transform_2(%arg0: i32) -> (i32, i32) {
    %c0_i32 = arith.constant 0 : i32
    %c0_i32_0 = arith.constant 0 : i32
    %c0_i32_1 = arith.constant 0 : i32
    return %c0_i32, %c0_i32_0 : i32, i32
  }
  func.func @transform_3(%arg0: i32) -> (i32, i32) {
    %c0_i32 = arith.constant 0 : i32
    %c0_i32_0 = arith.constant 0 : i32
    %c0_i32_1 = arith.constant 0 : i32
    return %c0_i32, %c0_i32_0 : i32, i32
  }
  func.func @transform_4(%arg0: i32) -> (i32, i32) {
    %c0_i32 = arith.constant 0 : i32
    %c0_i32_0 = arith.constant 0 : i32
    %c0_i32_1 = arith.constant 0 : i32
    return %c0_i32, %c0_i32_0 : i32, i32
  }
  func.func @transform_5(%arg0: i32) -> (i32, i32) {
    %c0_i32 = arith.constant 0 : i32
    %c0_i32_0 = arith.constant 0 : i32
    %c0_i32_1 = arith.constant 0 : i32
    return %c0_i32, %c0_i32_0 : i32, i32
  }
  func.func @transform_6(%arg0: i32) -> (i32, i32) {
    %c0_i32 = arith.constant 0 : i32
    %c0_i32_0 = arith.constant 0 : i32
    %c0_i32_1 = arith.constant 0 : i32
    return %c0_i32, %c0_i32_0 : i32, i32
  }
  func.func @transform_7(%arg0: i32) -> i32 {
    %c0_i32 = arith.constant 0 : i32
    %c0_i32_0 = arith.constant 0 : i32
    return %c0_i32 : i32
  }
  func.func @transform_8(%arg0: i32) -> (i32, i32) {
    %c0_i32 = arith.constant 0 : i32
    %c0_i32_0 = arith.constant 0 : i32
    return %c0_i32, %arg0 : i32, i32
  }
}

</mosaic_0001>

<bundles_post_ra>
// kernel: tpu_custom_call.1
= control target key start
LH: loop header
LB: loop body
LE: loop exit
PB: predicated region body
PF: predicated region fallthrough
CT: control target
= control target key end

     0   :  { %v4093_v10 = vmov 0   ;;  %s4094_s21 = smov 32   ;;  %vm80_vm0 = vcmask 261120   ;;  %s5474_s0 = inlined_call_operand.vmem [shape: f32[256,32], index: 0, kind: input, shape index: {}]   ;;  %s5475_s1 = inlined_call_operand.vmem [shape: f32[256,8], index: 1, kind: input, shape index: {}]   ;;  %s5476_s2 = inlined_call_operand.vmem [shape: bf16[128,128], index: 2, kind: input, shape index: {}]   ;;  %s5477_s3 = inlined_call_operand.vmem [shape: f32[1,128], index: 3, kind: input, shape index: {}]   ;;  %s5478_s4 = inlined_call_operand.vmem [shape: bf16[128,128], index: 4, kind: input, shape index: {}]   ;;  %s5479_s5 = inlined_call_operand.vmem [shape: f32[1,128], index: 5, kind: input, shape index: {}]   ;;  %s5480_s6 = inlined_call_operand.vmem [shape: f32[1,128], index: 6, kind: input, shape index: {}]   ;;  %s5481_s7 = inlined_call_operand.<no memory space> [shape: f32[1], index: 7, kind: input, shape index: {}]   ;;  %s5482_s8 = inlined_call_operand.hbm [shape: f32[1,256], index: 8, kind: output, shape index: {}]  }
   0x1   :  { %v97_v0 = vld [vmem:[%s5475_s1] sm:$0xff]  ;;  %v98_v1 = vld [vmem:[%s5475_s1 + $0x8] sm:$0xff]  ;;  %v99_v2 = vld [vmem:[%s5475_s1 + $0x10] sm:$0xff]  ;;  %4051 = vset.pattern.permute.xlu1 %v4093_v10  ;;  %4052 = vset.pattern.permute.xlu0 %v4093_v10 }
   0x2   :  { %v129_v3 = vpack.c.bf16 %v98_v1, %v97_v0  ;;  %v100_v4 = vld [vmem:[%s5475_s1 + $0x18] sm:$0xff]  ;;  %v101_v5 = vld [vmem:[%s5475_s1 + $0x20] sm:$0xff]  ;;  %v102_v6 = vld [vmem:[%s5475_s1 + $0x28] sm:$0xff] }
   0x3   :  { %v131_v7 = vpack.c.bf16 %v102_v6, %v101_v5  ;;  %v103_v8 = vld [vmem:[%s5475_s1 + $0x30] sm:$0xff]  ;;  %v104_v9 = vld [vmem:[%s5475_s1 + $0x38] sm:$0xff]  ;;  %v130_v11 = vpack.c.bf16 %v100_v4, %v99_v2  ;;  %v105_v13 = vld [vmem:[%s5475_s1 + $0x40] sm:$0xff] }
   0x4   :  { %161 = vrot.lane.b32.xlu0 %v129_v3, %s4094_s21  ;;  %v132_v12 = vpack.c.bf16 %v104_v9, %v103_v8  ;;  %v106_v14 = vld [vmem:[%s5475_s1 + $0x48] sm:$0xff]  ;;  %v107_v15 = vld [vmem:[%s5475_s1 + $0x50] sm:$0xff]  ;;  %v108_v16 = vld [vmem:[%s5475_s1 + $0x58] sm:$0xff] }
   0x5   :  { %165 = vrot.lane.b32.xlu1 %v131_v7, %s4094_s21  ;;  %v133_v17 = vpack.c.bf16 %v106_v14, %v105_v13  ;;  %v134_v18 = vpack.c.bf16 %v108_v16, %v107_v15  ;;  %v109_v19 = vld [vmem:[%s5475_s1 + $0x60] sm:$0xff]  ;;  %v110_v20 = vld [vmem:[%s5475_s1 + $0x68] sm:$0xff]  ;;  %v111_v21 = vld [vmem:[%s5475_s1 + $0x70] sm:$0xff] }
   0x6   :  { %v112_v22 = vld [vmem:[%s5475_s1 + $0x78] sm:$0xff]  ;;  %v113_v23 = vld [vmem:[%s5475_s1 + $0x80] sm:$0xff]  ;;  %v114_v24 = vld [vmem:[%s5475_s1 + $0x88] sm:$0xff]  ;;  %v135_v25 = vpack.c.bf16 %v110_v20, %v109_v19 }
   0x7   :  { %v115_v26 = vld [vmem:[%s5475_s1 + $0x90] sm:$0xff]  ;;  %v4053_v27 = vld [vmem:[%s5476_s2] sm:$0xff]   ;;  %v136_v28 = vpack.c.bf16 %v112_v22, %v111_v21  ;;  %v4054_v29 = vld [vmem:[%s5476_s2 + $0x8] sm:$0xff]   ;;  %v137_v33 = vpack.c.bf16 %v114_v24, %v113_v23 }
   0x8   :  { %163 = vrot.lane.b32.xlu0 %v130_v11, %s4094_s21  ;;  %v116_v30 = vld [vmem:[%s5475_s1 + $0x98] sm:$0xff]  ;;  %3951 = vmatprep.subr.bf16.mxu0 %v4053_v27  ;;  %v117_v31 = vld [vmem:[%s5475_s1 + $0xa0] sm:$0xff]  ;;  %v118_v32 = vld [vmem:[%s5475_s1 + $0xa8] sm:$0xff] }
   0x9   :  { %167 = vrot.lane.b32.xlu1 %v132_v12, %s4094_s21  ;;  %3952 = vmatpush3.bf16.msra.mxu0 %v4053_v27  ;;  %v119_v34 = vld [vmem:[%s5475_s1 + $0xb0] sm:$0xff]  ;;  %v32_v36 = vld [vmem:[%s5474_s0] sm:$0xff]  ;;  %v138_v37 = vpack.c.bf16 %v116_v30, %v115_v26  ;;  %v33_v38 = vld [vmem:[%s5474_s0 + $0x8] sm:$0xff]  ;;  %v139_v47 = vpack.c.bf16 %v118_v32, %v117_v31 }
   0xa   :  { %3953 = vmatprep.subr.bf16.mxu0 %v4054_v29  ;;  %v4055_v35 = vld [vmem:[%s5476_s2 + $0x10] sm:$0xff]   ;;  %v120_v39 = vld [vmem:[%s5475_s1 + $0xb8] sm:$0xff]  ;;  %v64_v40 = vpack.c.bf16 %v33_v38, %v32_v36  ;;  %v121_v43 = vld [vmem:[%s5475_s1 + $0xc0] sm:$0xff] }
   0xb   :  { %v34_v41 = vld [vmem:[%s5474_s0 + $0x10] sm:$0xff]  ;;  %v35_v42 = vld [vmem:[%s5474_s0 + $0x18] sm:$0xff]  ;;  %v122_v44 = vld [vmem:[%s5475_s1 + $0xc8] sm:$0xff]  ;;  %v140_v51 = vpack.c.bf16 %v120_v39, %v119_v34 }
   0xc   :  { %169 = vrot.lane.b32.xlu0 %v133_v17, %s4094_s21  ;;  %v4056_v45 = vld [vmem:[%s5476_s2 + $0x18] sm:$0xff]   ;;  %v65_v46 = vpack.c.bf16 %v35_v42, %v34_v41  ;;  %v123_v48 = vld [vmem:[%s5475_s1 + $0xd0] sm:$0xff]  ;;  %81 = vst.msk [vmem:[#allocation2] sm:$0xff] %vm80_vm0, %v64_v40  ;;  %v36_v49 = vld [vmem:[%s5474_s0 + $0x20] sm:$0xff]  ;;  %v141_v2 = vpack.c.bf16 %v122_v44, %v121_v43 }
   0xd   :  { %171 = vrot.lane.b32.xlu1 %v134_v18, %s4094_s21  ;;  %3954 = vmatpush3.bf16.msra.mxu0 %v4054_v29  ;;  %v37_v50 = vld [vmem:[%s5474_s0 + $0x28] sm:$0xff]  ;;  %v124_v52 = vld [vmem:[%s5475_s1 + $0xd8] sm:$0xff]  ;;  %v38_v54 = vld [vmem:[%s5474_s0 + $0x30] sm:$0xff] }
   0xe   :  { %3955 = vmatprep.subr.bf16.mxu0 %v4055_v35  ;;  %82 = vst.msk [vmem:[#allocation2 + $0x8] sm:$0xff] %vm80_vm0, %v65_v46  ;;  %v66_v53 = vpack.c.bf16 %v37_v50, %v36_v49  ;;  %v4057_v55 = vld [vmem:[%s5476_s2 + $0x20] sm:$0xff]   ;;  %v39_v56 = vld [vmem:[%s5474_s0 + $0x38] sm:$0xff]  ;;  %v41_v58 = vld [vmem:[%s5474_s0 + $0x48] sm:$0xff]  ;;  %v142_v9 = vpack.c.bf16 %v124_v52, %v123_v48 }
   0xf   :  { %v40_v57 = vld [vmem:[%s5474_s0 + $0x40] sm:$0xff]  ;;  %v126_v60 = vld [vmem:[%s5475_s1 + $0xe8] sm:$0xff]  ;;  %v67_v61 = vpack.c.bf16 %v39_v56, %v38_v54  ;;  %v42_v63 = vld [vmem:[%s5474_s0 + $0x50] sm:$0xff] }
  0x10   :  { %173 = vrot.lane.b32.xlu0 %v135_v25, %s4094_s21  ;;  %v125_v59 = vld [vmem:[%s5475_s1 + $0xe0] sm:$0xff]  ;;  %83 = vst.msk [vmem:[#allocation2 + $0x10] sm:$0xff] %vm80_vm0, %v66_v53  ;;  %v68_v62 = vpack.c.bf16 %v41_v58, %v40_v57  ;;  %v43_v0 = vld [vmem:[%s5474_s0 + $0x58] sm:$0xff]  ;;  %v127_v3 = vld [vmem:[%s5475_s1 + $0xf0] sm:$0xff] }
  0x11   :  { %175 = vrot.lane.b32.xlu1 %v136_v28, %s4094_s21  ;;  %3956 = vmatpush3.bf16.msra.mxu0 %v4055_v35  ;;  %v44_v1 = vld [vmem:[%s5474_s0 + $0x60] sm:$0xff]  ;;  %v128_v4 = vld [vmem:[%s5475_s1 + $0xf8] sm:$0xff]  ;;  %v69_v5 = vpack.c.bf16 %v43_v0, %v42_v63  ;;  %v45_v6 = vld [vmem:[%s5474_s0 + $0x68] sm:$0xff]  ;;  %84 = vst.msk [vmem:[#allocation2 + $0x18] sm:$0xff] %vm80_vm0, %v67_v61  ;;  %v143_v20 = vpack.c.bf16 %v126_v60, %v125_v59 }
  0x12   :  { %3957 = vmatprep.subr.bf16.mxu0 %v4056_v45  ;;  %v46_v7 = vld [vmem:[%s5474_s0 + $0x70] sm:$0xff]  ;;  %v47_v8 = vld [vmem:[%s5474_s0 + $0x78] sm:$0xff]  ;;  %85 = vst.msk [vmem:[#allocation2 + $0x20] sm:$0xff] %vm80_vm0, %v68_v62  ;;  %v70_v11 = vpack.c.bf16 %v45_v6, %v44_v1  ;;  %v48_v13 = vld [vmem:[%s5474_s0 + $0x80] sm:$0xff]  ;;  %v144_v24 = vpack.c.bf16 %v128_v4, %v127_v3 }
  0x13   :  { %v71_v12 = vpack.c.bf16 %v47_v8, %v46_v7  ;;  %v49_v14 = vld [vmem:[%s5474_s0 + $0x88] sm:$0xff]  ;;  %v50_v15 = vld [vmem:[%s5474_s0 + $0x90] sm:$0xff]  ;;  %86 = vst.msk [vmem:[#allocation2 + $0x28] sm:$0xff] %vm80_vm0, %v69_v5  ;;  %v51_v18 = vld [vmem:[%s5474_s0 + $0x98] sm:$0xff] }
  0x14   :  { %177 = vrot.lane.b32.xlu0 %v137_v33, %s4094_s21  ;;  %v4058_v16 = vld [vmem:[%s5476_s2 + $0x28] sm:$0xff]   ;;  %v72_v17 = vpack.c.bf16 %v49_v14, %v48_v13  ;;  %87 = vst.msk [vmem:[#allocation2 + $0x30] sm:$0xff] %vm80_vm0, %v70_v11  ;;  %v73_v19 = vpack.c.bf16 %v51_v18, %v50_v15  ;;  %v52_v21 = vld [vmem:[%s5474_s0 + $0xa0] sm:$0xff]  ;;  %v54_v23 = vld [vmem:[%s5474_s0 + $0xb0] sm:$0xff] }
  0x15   :  { %179 = vrot.lane.b32.xlu1 %v138_v37, %s4094_s21  ;;  %3958 = vmatpush3.bf16.msra.mxu0 %v4056_v45  ;;  %88 = vst.msk [vmem:[#allocation2 + $0x38] sm:$0xff] %vm80_vm0, %v71_v12  ;;  %v53_v22 = vld [vmem:[%s5474_s0 + $0xa8] sm:$0xff]  ;;  %v55_v26 = vld [vmem:[%s5474_s0 + $0xb8] sm:$0xff]  ;;  %v4059_v27 = vld [vmem:[%s5476_s2 + $0x30] sm:$0xff]  }
  0x16   :  { %3959 = vmatprep.subr.bf16.mxu0 %v4057_v55  ;;  %89 = vst.msk [vmem:[#allocation2 + $0x40] sm:$0xff] %vm80_vm0, %v72_v17  ;;  %90 = vst.msk [vmem:[#allocation2 + $0x48] sm:$0xff] %vm80_vm0, %v73_v19  ;;  %v74_v25 = vpack.c.bf16 %v53_v22, %v52_v21  ;;  %v75_v28 = vpack.c.bf16 %v55_v26, %v54_v23 }
  0x18   :  { %181 = vrot.lane.b32.xlu0 %v139_v47, %s4094_s21  ;;  %91 = vst.msk [vmem:[#allocation2 + $0x50] sm:$0xff] %vm80_vm0, %v74_v25  ;;  %92 = vst.msk [vmem:[#allocation2 + $0x58] sm:$0xff] %vm80_vm0, %v75_v28 }
  0x19   :  { %183 = vrot.lane.b32.xlu1 %v140_v51, %s4094_s21  ;;  %3960 = vmatpush3.bf16.msra.mxu0 %v4057_v55 }
  0x1a   :  { %3961 = vmatprep.subr.bf16.mxu0 %v4058_v16 }
  0x1c   :  { %185 = vrot.lane.b32.xlu0 %v141_v2, %s4094_s21 }
  0x1d   :  { %187 = vrot.lane.b32.xlu1 %v142_v9, %s4094_s21 }
  0x20   :  { %189 = vrot.lane.b32.xlu0 %v143_v20, %s4094_s21 }
  0x21   :  { %191 = vrot.lane.b32.xlu1 %v144_v24, %s4094_s21 }
  0x22   :  { %14 = vsyncpa [#allocation5], 0  ;;  %3962 = vmatpush3.bf16.msra.mxu0 %v4058_v16  ;;  %v4060_v29 = vld [vmem:[%s5476_s2 + $0x38] sm:$0xff]   ;;  %v56_v30 = vld [vmem:[%s5474_s0 + $0xc0] sm:$0xff]  ;;  %vm209_vm1 = vcmask 326912   ;;  %vm226_vm2 = vcmask 1047872  }
  0x23   :  { %3963 = vmatprep.subr.bf16.mxu0 %v4059_v27  ;;  %v57_v31 = vld [vmem:[%s5474_s0 + $0xc8] sm:$0xff]  ;;  %v58_v32 = vld [vmem:[%s5474_s0 + $0xd0] sm:$0xff]  ;;  %v59_v34 = vld [vmem:[%s5474_s0 + $0xd8] sm:$0xff]  ;;  %vm3671_vm3 = vcmask 130112   ;;  %vm3678_vm4 = vcmask 195712   ;;  %vm3685_vm5 = vcmask 261312  }
  0x24   :  { %v76_v33 = vpack.c.bf16 %v57_v31, %v56_v30  ;;  %v77_v35 = vpack.c.bf16 %v59_v34, %v58_v32  ;;  %v60_v36 = vld [vmem:[%s5474_s0 + $0xe0] sm:$0xff]  ;;  %v61_v37 = vld [vmem:[%s5474_s0 + $0xe8] sm:$0xff]  ;;  %v62_v38 = vld [vmem:[%s5474_s0 + $0xf0] sm:$0xff]  ;;  %vm3698_vm6 = vcmask 392512   ;;  %vm3705_vm7 = vcmask 458112  }
  0x25   :  { %v78_v39 = vpack.c.bf16 %v61_v37, %v60_v36  ;;  %v63_v40 = vld [vmem:[%s5474_s0 + $0xf8] sm:$0xff]  ;;  %v4061_v42 = vld [vmem:[%s5478_s4] sm:$0xff]   ;;  %v4062_v43 = vld [vmem:[%s5478_s4 + $0x8] sm:$0xff]   ;;  %vm3712_vm8 = vcmask 523712   ;;  %vm3719_vm9 = vcmask 589312   ;;  %vm3726_vm10 = vcmask 654912  }
  0x26   :  { %3964 = vmatpush3.bf16.msra.mxu0 %v4059_v27  ;;  %93 = vst.msk [vmem:[#allocation2 + $0x60] sm:$0xff] %vm80_vm0, %v76_v33  ;;  %94 = vst.msk [vmem:[#allocation2 + $0x68] sm:$0xff] %vm80_vm0, %v77_v35  ;;  %v79_v41 = vpack.c.bf16 %v63_v40, %v62_v38  ;;  %3999 = vmatprep.subr.bf16.mxu1 %v4061_v42  ;;  %v4063_v44 = vld [vmem:[%s5478_s4 + $0x10] sm:$0xff]   ;;  %v4064_v45 = vld [vmem:[%s5478_s4 + $0x18] sm:$0xff]   ;;  %vm3733_vm11 = vcmask 720512   ;;  %vm3740_vm12 = vcmask 786112  }
  0x27   :  { %3965 = vmatprep.subr.bf16.mxu0 %v4060_v29  ;;  %95 = vst.msk [vmem:[#allocation2 + $0x70] sm:$0xff] %vm80_vm0, %v78_v39  ;;  %4000 = vmatpush3.bf16.msra.mxu1 %v4061_v42  ;;  %v4065_v46 = vld [vmem:[%s5478_s4 + $0x20] sm:$0xff]   ;;  %v4066_v47 = vld [vmem:[%s5478_s4 + $0x28] sm:$0xff]   ;;  %v4068_v17 = vld [vmem:[%s5478_s4 + $0x38] sm:$0xff]   ;;  %vm3747_vm13 = vcmask 851712   ;;  %vm3754_vm14 = vcmask 917312  }
  0x28   :  { %96 = vst.msk [vmem:[#allocation2 + $0x78] sm:$0xff] %vm80_vm0, %v79_v41  ;;  %4001 = vmatprep.subr.bf16.mxu1 %v4062_v43  ;;  %v4467_v18 = vld [vmem:[%s5477_s3] ss:$0 sm:$0xff]  ;;  %vm3761_vm15 = vcmask 982912   ;;  %vm3768_vm0 = vcmask 1048512  }
  0x2a   :  { %3966 = vmatpush3.bf16.msra.mxu0 %v4060_v29 }
  0x2b   :  { %4002 = vmatpush3.bf16.msra.mxu1 %v4062_v43 }
  0x2c   :  { %4003 = vmatprep.subr.bf16.mxu1 %v4063_v44 }
  0x2f   :  { %4004 = vmatpush3.bf16.msra.mxu1 %v4063_v44 }
  0x30   :  { %4005 = vmatprep.subr.bf16.mxu1 %v4064_v45 }
  0x33   :  { %4006 = vmatpush3.bf16.msra.mxu1 %v4064_v45 }
  0x34   :  { %4007 = vmatprep.subr.bf16.mxu1 %v4065_v46 }
  0x37   :  { %4008 = vmatpush3.bf16.msra.mxu1 %v4065_v46 }
  0x38   :  { %4009 = vmatprep.subr.bf16.mxu1 %v4066_v47 }
  0x3b   :  { %4010 = vmatpush3.bf16.msra.mxu1 %v4066_v47 }
  0x76   :  { %v162_v48 = vpop.permute.xlu0 %161 }
  0x77   :  { %210 = vst.msk [vmem:[#allocation2] sm:$0xff] %vm209_vm1, %v162_v48  ;;  %v166_v49 = vpop.permute.xlu1 %165 }
  0x78   :  { %227 = vst.msk [vmem:[#allocation2] sm:$0xff] %vm226_vm2, %v4093_v10 }
  0x79   :  { %212 = vst.msk [vmem:[#allocation2 + $0x10] sm:$0xff] %vm209_vm1, %v166_v49 }
  0x7a   :  { %229 = vst.msk [vmem:[#allocation2 + $0x10] sm:$0xff] %vm226_vm2, %v4093_v10  ;;  %v164_v50 = vpop.permute.xlu0 %163 }
  0x7b   :  { %211 = vst.msk [vmem:[#allocation2 + $0x8] sm:$0xff] %vm209_vm1, %v164_v50  ;;  %v168_v51 = vpop.permute.xlu1 %167 }
  0x7c   :  { %228 = vst.msk [vmem:[#allocation2 + $0x8] sm:$0xff] %vm226_vm2, %v4093_v10 }
  0x7d   :  { %213 = vst.msk [vmem:[#allocation2 + $0x18] sm:$0xff] %vm209_vm1, %v168_v51 }
  0x7e   :  { %230 = vst.msk [vmem:[#allocation2 + $0x18] sm:$0xff] %vm226_vm2, %v4093_v10  ;;  %v170_v52 = vpop.permute.xlu0 %169 }
  0x7f   :  { %v244_v53 = vld [vmem:[#allocation2] sm:$0xff]  ;;  %214 = vst.msk [vmem:[#allocation2 + $0x20] sm:$0xff] %vm209_vm1, %v170_v52  ;;  %v172_v54 = vpop.permute.xlu1 %171 }
  0x80   :  { %3967 = vmatprep.mubr.bf16.mxu0 %v244_v53  ;;  %231 = vst.msk [vmem:[#allocation2 + $0x20] sm:$0xff] %vm226_vm2, %v4093_v10 }
  0x81   :  { %215 = vst.msk [vmem:[#allocation2 + $0x28] sm:$0xff] %vm209_vm1, %v172_v54  ;;  %v246_v55 = vld [vmem:[#allocation2 + $0x10] sm:$0xff] }
  0x82   :  { %232 = vst.msk [vmem:[#allocation2 + $0x28] sm:$0xff] %vm226_vm2, %v4093_v10  ;;  %v174_v56 = vpop.permute.xlu0 %173 }
  0x83   :  { %v245_v57 = vld [vmem:[#allocation2 + $0x8] sm:$0xff]  ;;  %216 = vst.msk [vmem:[#allocation2 + $0x30] sm:$0xff] %vm209_vm1, %v174_v56  ;;  %v176_v58 = vpop.permute.xlu1 %175 }
  0x84   :  { %3968 = vmatmul.mubr.bf16.vlgmr.msra.gmra.mrb[0].mxu0 %v245_v57  ;;  %233 = vst.msk [vmem:[#allocation2 + $0x30] sm:$0xff] %vm226_vm2, %v4093_v10 }
  0x85   :  { %217 = vst.msk [vmem:[#allocation2 + $0x38] sm:$0xff] %vm209_vm1, %v176_v58  ;;  %3971 = vmatprep.mubr.bf16.mxu0 %v246_v55  ;;  %v247_v61 = vld [vmem:[#allocation2 + $0x18] sm:$0xff] }
  0x86   :  { %234 = vst.msk [vmem:[#allocation2 + $0x38] sm:$0xff] %vm226_vm2, %v4093_v10  ;;  %v178_v59 = vpop.permute.xlu0 %177 }
  0x87   :  { %218 = vst.msk [vmem:[#allocation2 + $0x40] sm:$0xff] %vm209_vm1, %v178_v59  ;;  %v180_v60 = vpop.permute.xlu1 %179  ;;  %v248_v62 = vld [vmem:[#allocation2 + $0x20] sm:$0xff] }
  0x88   :  { %235 = vst.msk [vmem:[#allocation2 + $0x40] sm:$0xff] %vm226_vm2, %v4093_v10 }
  0x89   :  { %219 = vst.msk [vmem:[#allocation2 + $0x48] sm:$0xff] %vm209_vm1, %v180_v60  ;;  %v249_v3 = vld [vmem:[#allocation2 + $0x28] sm:$0xff] }
  0x8a   :  { %236 = vst.msk [vmem:[#allocation2 + $0x48] sm:$0xff] %vm226_vm2, %v4093_v10  ;;  %v182_v63 = vpop.permute.xlu0 %181 }
  0x8b   :  { %220 = vst.msk [vmem:[#allocation2 + $0x50] sm:$0xff] %vm209_vm1, %v182_v63  ;;  %v184_v0 = vpop.permute.xlu1 %183  ;;  %v250_v4 = vld [vmem:[#allocation2 + $0x30] sm:$0xff] }
  0x8c   :  { %3972 = vmatmul.mubr.bf16.gmra.mrb[4].mxu0 %v247_v61  ;;  %237 = vst.msk [vmem:[#allocation2 + $0x50] sm:$0xff] %vm226_vm2, %v4093_v10 }
  0x8d   :  { %221 = vst.msk [vmem:[#allocation2 + $0x58] sm:$0xff] %vm209_vm1, %v184_v0  ;;  %3975 = vmatprep.mubr.bf16.mxu0 %v248_v62  ;;  %v251_v7 = vld [vmem:[#allocation2 + $0x38] sm:$0xff] }
  0x8e   :  { %238 = vst.msk [vmem:[#allocation2 + $0x58] sm:$0xff] %vm226_vm2, %v4093_v10  ;;  %v186_v1 = vpop.permute.xlu0 %185 }
  0x8f   :  { %222 = vst.msk [vmem:[#allocation2 + $0x60] sm:$0xff] %vm209_vm1, %v186_v1  ;;  %v188_v2 = vpop.permute.xlu1 %187  ;;  %v252_v8 = vld [vmem:[#allocation2 + $0x40] sm:$0xff] }
  0x90   :  { %239 = vst.msk [vmem:[#allocation2 + $0x60] sm:$0xff] %vm226_vm2, %v4093_v10 }
  0x91   :  { %223 = vst.msk [vmem:[#allocation2 + $0x68] sm:$0xff] %vm209_vm1, %v188_v2  ;;  %v253_v9 = vld [vmem:[#allocation2 + $0x48] sm:$0xff] }
  0x92   :  { %240 = vst.msk [vmem:[#allocation2 + $0x68] sm:$0xff] %vm226_vm2, %v4093_v10  ;;  %v190_v5 = vpop.permute.xlu0 %189 }
  0x93   :  { %224 = vst.msk [vmem:[#allocation2 + $0x70] sm:$0xff] %vm209_vm1, %v190_v5  ;;  %v192_v6 = vpop.permute.xlu1 %191  ;;  %v254_v11 = vld [vmem:[#allocation2 + $0x50] sm:$0xff] }
  0x94   :  { %3976 = vmatmul.mubr.bf16.gmra.mrb[8].mxu0 %v249_v3  ;;  %241 = vst.msk [vmem:[#allocation2 + $0x70] sm:$0xff] %vm226_vm2, %v4093_v10 }
  0x95   :  { %225 = vst.msk [vmem:[#allocation2 + $0x78] sm:$0xff] %vm209_vm1, %v192_v6  ;;  %3979 = vmatprep.mubr.bf16.mxu0 %v250_v4  ;;  %v255_v12 = vld [vmem:[#allocation2 + $0x58] sm:$0xff] }
  0x96   :  { %242 = vst.msk [vmem:[#allocation2 + $0x78] sm:$0xff] %vm226_vm2, %v4093_v10  ;;  %v4067_v10 = vld [vmem:[%s5478_s4 + $0x30] sm:$0xff]  }
  0x97   :  { %v256_v13 = vld [vmem:[#allocation2 + $0x60] sm:$0xff]  ;;  %4011 = vmatprep.subr.bf16.mxu1 %v4067_v10 }
  0x98   :  { %4012 = vmatpush3.bf16.msra.mxu1 %v4067_v10 }
  0x99   :  { %v257_v14 = vld [vmem:[#allocation2 + $0x68] sm:$0xff]  ;;  %4013 = vmatprep.subr.bf16.mxu1 %v4068_v17 }
  0x9b   :  { %v258_v15 = vld [vmem:[#allocation2 + $0x70] sm:$0xff] }
  0x9c   :  { %3980 = vmatmul.mubr.bf16.gmra.mrb[12].mxu0 %v251_v7  ;;  %4014 = vmatpush3.bf16.msra.mxu1 %v4068_v17 }
  0x9d   :  { %3983 = vmatprep.mubr.bf16.mxu0 %v252_v8  ;;  %v259_v16 = vld [vmem:[#allocation2 + $0x78] sm:$0xff] }
  0xa4   :  { %3984 = vmatmul.mubr.bf16.gmra.mrb[16].mxu0 %v253_v9 }
  0xa5   :  { %3987 = vmatprep.mubr.bf16.mxu0 %v254_v11 }
  0xac   :  { %3988 = vmatmul.mubr.bf16.gmra.mrb[20].mxu0 %v255_v12 }
  0xad   :  { %3991 = vmatprep.mubr.bf16.mxu0 %v256_v13 }
  0xb4   :  { %3992 = vmatmul.mubr.bf16.gmra.mrb[24].mxu0 %v257_v14 }
  0xb5   :  { %3995 = vmatprep.mubr.bf16.mxu0 %v258_v15 }
  0xbc   :  { %3996 = vmatmul.mubr.bf16.gmra.mrb[28].mxu0 %v259_v16 }
 0x157   :  { %v3969_v19 = vpop.f32.mrb[0].mxu0 }
 0x158   :  { %v374_v20 = vadd.f32 %v3969_v19, %v4467_v18  ;;  %v365_v21 = vpop.f32.mrb[1].mxu0 }
 0x159   :  { %v366_v22 = vadd.f32 %v4467_v18, %v365_v21  ;;  %v3970_v23 = vpop.f32.mrb[2].mxu0 }
 0x15a   :  { %v377_v24 = vadd.f32 %v3970_v23, %v4467_v18  ;;  %v368_v25 = vpop.f32.mrb[3].mxu0  ;;  %v494_v27 = vmax.f32 %v374_v20, 0.0 }
 0x15b   :  { %v369_v26 = vadd.f32 %v4467_v18, %v368_v25  ;;  %v492_v29 = vmax.f32 %v366_v22, 0.0 }
 0x15c   :  { %v495_v28 = vmax.f32 %v377_v24, 0.0 }
 0x15d   :  { %v493_v30 = vmax.f32 %v369_v26, 0.0 }
 0x15e   :  { %v525_v31 = vpack.c.bf16 %v495_v28, %v494_v27 }
 0x15f   :  { %v3973_v32 = vpop.f32.mrb[4].mxu0  ;;  %v524_v33 = vpack.c.bf16 %v493_v30, %v492_v29 }
 0x160   :  { %v390_v34 = vadd.f32 %v3973_v32, %v4467_v18  ;;  %v381_v35 = vpop.f32.mrb[5].mxu0 }
 0x161   :  { %v382_v36 = vadd.f32 %v4467_v18, %v381_v35  ;;  %v3974_v37 = vpop.f32.mrb[6].mxu0  ;;  %4015 = vmatprep.mubr.bf16.mxu1 %v524_v33 }
 0x162   :  { %v498_v38 = vmax.f32 %v390_v34, 0.0  ;;  %v393_v39 = vadd.f32 %v3974_v37, %v4467_v18  ;;  %v384_v40 = vpop.f32.mrb[7].mxu0  ;;  %4016 = vmatmul.mubr.bf16.vlgmr.msra.gmra.mrb[0].mxu1 %v525_v31 }
 0x163   :  { %v496_v41 = vmax.f32 %v382_v36, 0.0  ;;  %v385_v42 = vadd.f32 %v4467_v18, %v384_v40 }
 0x164   :  { %v499_v43 = vmax.f32 %v393_v39, 0.0 }
 0x165   :  { %v497_v44 = vmax.f32 %v385_v42, 0.0 }
 0x166   :  { %v527_v45 = vpack.c.bf16 %v499_v43, %v498_v38 }
 0x167   :  { %v526_v46 = vpack.c.bf16 %v497_v44, %v496_v41  ;;  %v3977_v47 = vpop.f32.mrb[8].mxu0 }
 0x168   :  { %v406_v48 = vadd.f32 %v3977_v47, %v4467_v18  ;;  %v397_v49 = vpop.f32.mrb[9].mxu0 }
 0x169   :  { %v398_v50 = vadd.f32 %v4467_v18, %v397_v49  ;;  %v3978_v51 = vpop.f32.mrb[10].mxu0  ;;  %4019 = vmatprep.mubr.bf16.mxu1 %v526_v46 }
 0x16a   :  { %v502_v52 = vmax.f32 %v406_v48, 0.0  ;;  %v409_v53 = vadd.f32 %v3978_v51, %v4467_v18  ;;  %v400_v54 = vpop.f32.mrb[11].mxu0  ;;  %4020 = vmatmul.mubr.bf16.gmra.mrb[4].mxu1 %v527_v45 }
 0x16b   :  { %v500_v55 = vmax.f32 %v398_v50, 0.0  ;;  %v401_v56 = vadd.f32 %v4467_v18, %v400_v54 }
 0x16c   :  { %v503_v57 = vmax.f32 %v409_v53, 0.0 }
 0x16d   :  { %v501_v58 = vmax.f32 %v401_v56, 0.0 }
 0x16e   :  { %v529_v59 = vpack.c.bf16 %v503_v57, %v502_v52 }
 0x16f   :  { %v528_v60 = vpack.c.bf16 %v501_v58, %v500_v55  ;;  %v3981_v61 = vpop.f32.mrb[12].mxu0 }
 0x170   :  { %v422_v62 = vadd.f32 %v3981_v61, %v4467_v18  ;;  %v413_v63 = vpop.f32.mrb[13].mxu0 }
 0x171   :  { %v414_v0 = vadd.f32 %v4467_v18, %v413_v63  ;;  %v3982_v1 = vpop.f32.mrb[14].mxu0  ;;  %4023 = vmatprep.mubr.bf16.mxu1 %v528_v60 }
 0x172   :  { %v506_v2 = vmax.f32 %v422_v62, 0.0  ;;  %v425_v3 = vadd.f32 %v3982_v1, %v4467_v18  ;;  %v416_v4 = vpop.f32.mrb[15].mxu0  ;;  %4024 = vmatmul.mubr.bf16.gmra.mrb[8].mxu1 %v529_v59 }
 0x173   :  { %v504_v5 = vmax.f32 %v414_v0, 0.0  ;;  %v417_v6 = vadd.f32 %v4467_v18, %v416_v4  ;;  %v4504_v4 = vld [vmem:[%s5479_s5] ss:$0 sm:$0xff] }
 0x174   :  { %v507_v7 = vmax.f32 %v425_v3, 0.0 }
 0x175   :  { %v505_v8 = vmax.f32 %v417_v6, 0.0 }
 0x176   :  { %v531_v9 = vpack.c.bf16 %v507_v7, %v506_v2 }
 0x177   :  { %v530_v11 = vpack.c.bf16 %v505_v8, %v504_v5  ;;  %v3985_v12 = vpop.f32.mrb[16].mxu0 }
 0x178   :  { %v438_v13 = vadd.f32 %v3985_v12, %v4467_v18  ;;  %v429_v14 = vpop.f32.mrb[17].mxu0 }
 0x179   :  { %v430_v15 = vadd.f32 %v4467_v18, %v429_v14  ;;  %v3986_v16 = vpop.f32.mrb[18].mxu0  ;;  %4027 = vmatprep.mubr.bf16.mxu1 %v530_v11 }
 0x17a   :  { %v510_v10 = vmax.f32 %v438_v13, 0.0  ;;  %v441_v17 = vadd.f32 %v3986_v16, %v4467_v18  ;;  %v432_v19 = vpop.f32.mrb[19].mxu0  ;;  %4028 = vmatmul.mubr.bf16.gmra.mrb[12].mxu1 %v531_v9 }
 0x17b   :  { %v508_v20 = vmax.f32 %v430_v15, 0.0  ;;  %v433_v21 = vadd.f32 %v4467_v18, %v432_v19 }
 0x17c   :  { %v511_v22 = vmax.f32 %v441_v17, 0.0 }
 0x17d   :  { %v509_v23 = vmax.f32 %v433_v21, 0.0 }
 0x17e   :  { %v533_v24 = vpack.c.bf16 %v511_v22, %v510_v10 }
 0x17f   :  { %v532_v25 = vpack.c.bf16 %v509_v23, %v508_v20  ;;  %v3989_v26 = vpop.f32.mrb[20].mxu0 }
 0x180   :  { %v454_v27 = vadd.f32 %v3989_v26, %v4467_v18  ;;  %v445_v28 = vpop.f32.mrb[21].mxu0 }
 0x181   :  { %v446_v29 = vadd.f32 %v4467_v18, %v445_v28  ;;  %v3990_v30 = vpop.f32.mrb[22].mxu0  ;;  %4031 = vmatprep.mubr.bf16.mxu1 %v532_v25 }
 0x182   :  { %v514_v31 = vmax.f32 %v454_v27, 0.0  ;;  %v457_v32 = vadd.f32 %v3990_v30, %v4467_v18  ;;  %v448_v33 = vpop.f32.mrb[23].mxu0  ;;  %4032 = vmatmul.mubr.bf16.gmra.mrb[16].mxu1 %v533_v24 }
 0x183   :  { %v512_v34 = vmax.f32 %v446_v29, 0.0  ;;  %v449_v35 = vadd.f32 %v4467_v18, %v448_v33 }
 0x184   :  { %v515_v36 = vmax.f32 %v457_v32, 0.0 }
 0x185   :  { %v513_v37 = vmax.f32 %v449_v35, 0.0 }
 0x186   :  { %v535_v38 = vpack.c.bf16 %v515_v36, %v514_v31 }
 0x187   :  { %v534_v39 = vpack.c.bf16 %v513_v37, %v512_v34  ;;  %v3993_v40 = vpop.f32.mrb[24].mxu0 }
 0x188   :  { %v470_v41 = vadd.f32 %v3993_v40, %v4467_v18  ;;  %v461_v42 = vpop.f32.mrb[25].mxu0 }
 0x189   :  { %v462_v43 = vadd.f32 %v4467_v18, %v461_v42  ;;  %v3994_v44 = vpop.f32.mrb[26].mxu0  ;;  %4035 = vmatprep.mubr.bf16.mxu1 %v534_v39 }
 0x18a   :  { %v518_v45 = vmax.f32 %v470_v41, 0.0  ;;  %v473_v46 = vadd.f32 %v3994_v44, %v4467_v18  ;;  %v464_v47 = vpop.f32.mrb[27].mxu0  ;;  %4036 = vmatmul.mubr.bf16.gmra.mrb[20].mxu1 %v535_v38 }
 0x18b   :  { %v516_v48 = vmax.f32 %v462_v43, 0.0  ;;  %v465_v49 = vadd.f32 %v4467_v18, %v464_v47 }
 0x18c   :  { %v519_v50 = vmax.f32 %v473_v46, 0.0 }
 0x18d   :  { %v517_v51 = vmax.f32 %v465_v49, 0.0 }
 0x18e   :  { %v537_v52 = vpack.c.bf16 %v519_v50, %v518_v45 }
 0x18f   :  { %v536_v53 = vpack.c.bf16 %v517_v51, %v516_v48  ;;  %v3997_v54 = vpop.f32.mrb[28].mxu0 }
 0x190   :  { %v486_v55 = vadd.f32 %v3997_v54, %v4467_v18  ;;  %v477_v56 = vpop.f32.mrb[29].mxu0 }
 0x191   :  { %v478_v57 = vadd.f32 %v4467_v18, %v477_v56  ;;  %v3998_v58 = vpop.f32.mrb[30].mxu0  ;;  %4039 = vmatprep.mubr.bf16.mxu1 %v536_v53 }
 0x192   :  { %v522_v59 = vmax.f32 %v486_v55, 0.0  ;;  %v489_v60 = vadd.f32 %v3998_v58, %v4467_v18  ;;  %v480_v61 = vpop.f32.mrb[31].mxu0  ;;  %4040 = vmatmul.mubr.bf16.gmra.mrb[24].mxu1 %v537_v52 }
 0x193   :  { %v520_v62 = vmax.f32 %v478_v57, 0.0  ;;  %v481_v63 = vadd.f32 %v4467_v18, %v480_v61  ;;  %v4511_v18 = vld [vmem:[%s5480_s6] ss:$0 sm:$0xff] }
 0x194   :  { %v523_v0 = vmax.f32 %v489_v60, 0.0 }
 0x195   :  { %v521_v1 = vmax.f32 %v481_v63, 0.0 }
 0x196   :  { %v539_v2 = vpack.c.bf16 %v523_v0, %v522_v59 }
 0x197   :  { %v538_v3 = vpack.c.bf16 %v521_v1, %v520_v62 }
 0x199   :  { %4043 = vmatprep.mubr.bf16.mxu1 %v538_v3 }
 0x19a   :  { %4044 = vmatmul.mubr.bf16.gmra.mrb[28].mxu1 %v539_v2 }
 0x235   :  { %v4017_v5 = vpop.f32.mrb[0].mxu1 }
 0x236   :  { %v654_v6 = vadd.f32 %v4017_v5, %v4504_v4  ;;  %v645_v7 = vpop.f32.mrb[1].mxu1 }
 0x237   :  { %v646_v8 = vadd.f32 %v4504_v4, %v645_v7  ;;  %v4018_v9 = vpop.f32.mrb[2].mxu1 }
 0x238   :  { %v774_v11 = vmax.f32 %v654_v6, 0.0  ;;  %v648_v12 = vpop.f32.mrb[3].mxu1  ;;  %v657_v15 = vadd.f32 %v4018_v9, %v4504_v4 }
 0x239   :  { %v649_v13 = vadd.f32 %v4504_v4, %v648_v12  ;;  %v772_v14 = vmax.f32 %v646_v8, 0.0 }
 0x23a   :  { %v813_v16 = vmul.f32 %v4511_v18, %v774_v11  ;;  %v775_v20 = vmax.f32 %v657_v15, 0.0 }
 0x23b   :  { %v773_v10 = vmax.f32 %v649_v13, 0.0  ;;  %v811_v23 = vmul.f32 %v4511_v18, %v772_v14 }
 0x23c   :  { %847 = vadd.xlane.f32.xlu0 %v813_v16  ;;  %v814_v33 = vmul.f32 %v4511_v18, %v775_v20 }
 0x23d   :  { %v4021_v17 = vpop.f32.mrb[4].mxu1  ;;  %v812_v19 = vmul.f32 %v4511_v18, %v773_v10 }
 0x23e   :  { %v670_v21 = vadd.f32 %v4021_v17, %v4504_v4  ;;  %v661_v22 = vpop.f32.mrb[5].mxu1 }
 0x23f   :  { %v662_v24 = vadd.f32 %v4504_v4, %v661_v22  ;;  %v4022_v25 = vpop.f32.mrb[6].mxu1  ;;  %845 = vadd.xlane.f32.xlu1 %v812_v19 }
 0x240   :  { %v778_v26 = vmax.f32 %v670_v21, 0.0  ;;  %v673_v27 = vadd.f32 %v4022_v25, %v4504_v4  ;;  %v664_v28 = vpop.f32.mrb[7].mxu1  ;;  %843 = vadd.xlane.f32.xlu0 %v811_v23 }
 0x241   :  { %v665_v29 = vadd.f32 %v4504_v4, %v664_v28  ;;  %v776_v30 = vmax.f32 %v662_v24, 0.0 }
 0x242   :  { %v779_v31 = vmax.f32 %v673_v27, 0.0  ;;  %v817_v32 = vmul.f32 %v4511_v18, %v778_v26 }
 0x243   :  { %v777_v34 = vmax.f32 %v665_v29, 0.0  ;;  %v815_v38 = vmul.f32 %v4511_v18, %v776_v30 }
 0x244   :  { %855 = vadd.xlane.f32.xlu1 %v817_v32  ;;  %849 = vadd.xlane.f32.xlu0 %v814_v33  ;;  %v818_v39 = vmul.f32 %v4511_v18, %v779_v31 }
 0x245   :  { %v4025_v35 = vpop.f32.mrb[8].mxu1  ;;  %v816_v45 = vmul.f32 %v4511_v18, %v777_v34 }
 0x246   :  { %v686_v36 = vadd.f32 %v4025_v35, %v4504_v4  ;;  %v677_v37 = vpop.f32.mrb[9].mxu1 }
 0x247   :  { %v678_v40 = vadd.f32 %v4504_v4, %v677_v37  ;;  %v4026_v41 = vpop.f32.mrb[10].mxu1 }
 0x248   :  { %v782_v42 = vmax.f32 %v686_v36, 0.0  ;;  %v689_v43 = vadd.f32 %v4026_v41, %v4504_v4  ;;  %v680_v44 = vpop.f32.mrb[11].mxu1  ;;  %851 = vadd.xlane.f32.xlu1 %v815_v38  ;;  %857 = vadd.xlane.f32.xlu0 %v818_v39 }
 0x249   :  { %v780_v46 = vmax.f32 %v678_v40, 0.0  ;;  %v681_v48 = vadd.f32 %v4504_v4, %v680_v44 }
 0x24a   :  { %v783_v47 = vmax.f32 %v689_v43, 0.0  ;;  %v821_v49 = vmul.f32 %v4511_v18, %v782_v42 }
 0x24b   :  { %v781_v51 = vmax.f32 %v681_v48, 0.0  ;;  %v819_v54 = vmul.f32 %v4511_v18, %v780_v46 }
 0x24c   :  { %863 = vadd.xlane.f32.xlu1 %v821_v49  ;;  %853 = vadd.xlane.f32.xlu0 %v816_v45  ;;  %v822_v55 = vmul.f32 %v4511_v18, %v783_v47 }
 0x24d   :  { %v4029_v50 = vpop.f32.mrb[12].mxu1  ;;  %v820_v1 = vmul.f32 %v4511_v18, %v781_v51 }
 0x24e   :  { %v702_v52 = vadd.f32 %v4029_v50, %v4504_v4  ;;  %v693_v53 = vpop.f32.mrb[13].mxu1 }
 0x24f   :  { %v694_v56 = vadd.f32 %v4504_v4, %v693_v53  ;;  %v4030_v57 = vpop.f32.mrb[14].mxu1 }
 0x250   :  { %v786_v58 = vmax.f32 %v702_v52, 0.0  ;;  %v705_v59 = vadd.f32 %v4030_v57, %v4504_v4  ;;  %v696_v60 = vpop.f32.mrb[15].mxu1  ;;  %859 = vadd.xlane.f32.xlu1 %v819_v54  ;;  %865 = vadd.xlane.f32.xlu0 %v822_v55 }
 0x251   :  { %v697_v61 = vadd.f32 %v4504_v4, %v696_v60  ;;  %v784_v62 = vmax.f32 %v694_v56, 0.0 }
 0x252   :  { %v787_v63 = vmax.f32 %v705_v59, 0.0  ;;  %v825_v0 = vmul.f32 %v4511_v18, %v786_v58 }
 0x253   :  { %v785_v2 = vmax.f32 %v697_v61, 0.0  ;;  %v823_v7 = vmul.f32 %v4511_v18, %v784_v62 }
 0x254   :  { %871 = vadd.xlane.f32.xlu1 %v825_v0  ;;  %861 = vadd.xlane.f32.xlu0 %v820_v1  ;;  %v826_v8 = vmul.f32 %v4511_v18, %v787_v63 }
 0x255   :  { %v4033_v3 = vpop.f32.mrb[16].mxu1  ;;  %v824_v15 = vmul.f32 %v4511_v18, %v785_v2 }
 0x256   :  { %v718_v5 = vadd.f32 %v4033_v3, %v4504_v4  ;;  %v709_v6 = vpop.f32.mrb[17].mxu1 }
 0x257   :  { %v710_v9 = vadd.f32 %v4504_v4, %v709_v6  ;;  %v4034_v11 = vpop.f32.mrb[18].mxu1 }
 0x258   :  { %v790_v12 = vmax.f32 %v718_v5, 0.0  ;;  %v721_v13 = vadd.f32 %v4034_v11, %v4504_v4  ;;  %v712_v14 = vpop.f32.mrb[19].mxu1  ;;  %867 = vadd.xlane.f32.xlu1 %v823_v7  ;;  %873 = vadd.xlane.f32.xlu0 %v826_v8  ;;  %v4095_v11 = vmov 1966171168  }
 0x259   :  { %v788_v16 = vmax.f32 %v710_v9, 0.0  ;;  %v713_v17 = vadd.f32 %v4504_v4, %v712_v14  ;;  %v972_v9 = vlaneseq }
 0x25a   :  { %v791_v10 = vmax.f32 %v721_v13, 0.0  ;;  %v829_v19 = vmul.f32 %v4511_v18, %v790_v12  ;;  %v4581_v13 = vstv %s5481_s7  ;;  %s4096_s7 = smov [#allocation4]  }
 0x25b   :  { %v789_v21 = vmax.f32 %v713_v17, 0.0  ;;  %v827_v24 = vmul.f32 %v4511_v18, %v788_v16  ;;  %v4576_v12 = vshrl.u32 %v972_v9, 7  ;;  %s3876_s14 = sshll.u32 %s4096_s7, 4  ;;  %s3877_s14 = int_to_ptr.vmem [resolvable:$true] %s3876_s14 }
 0x25c   :  { %879 = vadd.xlane.f32.xlu1 %v829_v19  ;;  %869 = vadd.xlane.f32.xlu0 %v824_v15  ;;  %v830_v25 = vmul.f32 %v4511_v18, %v791_v10  ;;  %s4069_s15 = scalar_lea.vmem %s3877_s14, 32  ;;  %p4074_p1 = scmp.lt.s32.totalorder %s3877_s14, %s3877_s14 }
 0x25d   :  { %v4037_v20 = vpop.f32.mrb[20].mxu1  ;;  %v828_v35 = vmul.f32 %v4511_v18, %v789_v21  ;;  %v4584_v15 = vsub.s32 0, %v4576_v12  ;;  %v4590_v16 = vsub.s32 2, %v4576_v12  ;;  %v4593_v10 = vsub.s32 3, %v4576_v12  ;;  %p4070_p0 = scmp.ne.s32.totalorder %s3877_s14, %s4069_s15  ;;  %p4075_p2 = scmp.lt.s32.totalorder %s4069_s15, %s4069_s15 }
 0x25e   :  { %v734_v22 = vadd.f32 %v4037_v20, %v4504_v4  ;;  %v725_v23 = vpop.f32.mrb[21].mxu1  ;;  %v4596_v19 = vsub.s32 4, %v4576_v12  ;;  %v4599_v20 = vsub.s32 5, %v4576_v12  ;;  %v4602_v21 = vsub.s32 6, %v4576_v12 }
 0x25f   :  { %v726_v26 = vadd.f32 %v4504_v4, %v725_v23  ;;  %v4038_v27 = vpop.f32.mrb[22].mxu1  ;;  %v4606_v23 = vsub.s32 7, %v4576_v12  ;;  %p4076_p3 = por %p4075_p2, %p4074_p1 }
 0x260   :  { %v794_v28 = vmax.f32 %v734_v22, 0.0  ;;  %v737_v29 = vadd.f32 %v4038_v27, %v4504_v4  ;;  %v728_v30 = vpop.f32.mrb[23].mxu1  ;;  %875 = vadd.xlane.f32.xlu1 %v827_v24  ;;  %881 = vadd.xlane.f32.xlu0 %v830_v25 }
 0x261   :  { %v729_v31 = vadd.f32 %v4504_v4, %v728_v30  ;;  %v792_v32 = vmax.f32 %v726_v26, 0.0  ;;  %p4077_p4 = pnand %p4076_p3, %p4070_p0 }
 0x262   :  { %v795_v33 = vmax.f32 %v737_v29, 0.0  ;;  %v833_v34 = vmul.f32 %v4511_v18, %v794_v28 }
 0x263   :  { %v793_v36 = vmax.f32 %v729_v31, 0.0  ;;  %v831_v40 = vmul.f32 %v4511_v18, %v792_v32 }
 0x264   :  { %887 = vadd.xlane.f32.xlu1 %v833_v34  ;;  %877 = vadd.xlane.f32.xlu0 %v828_v35  ;;  %v834_v41 = vmul.f32 %v4511_v18, %v795_v33 }
 0x265   :  { %v4041_v37 = vpop.f32.mrb[24].mxu1  ;;  %v832_v47 = vmul.f32 %v4511_v18, %v793_v36 }
 0x266   :  { %v750_v38 = vadd.f32 %v4041_v37, %v4504_v4  ;;  %v741_v39 = vpop.f32.mrb[25].mxu1 }
 0x267   :  { %v742_v42 = vadd.f32 %v4504_v4, %v741_v39  ;;  %v4042_v43 = vpop.f32.mrb[26].mxu1 }
 0x268   :  { %v798_v44 = vmax.f32 %v750_v38, 0.0  ;;  %v753_v45 = vadd.f32 %v4042_v43, %v4504_v4  ;;  %v744_v46 = vpop.f32.mrb[27].mxu1  ;;  %883 = vadd.xlane.f32.xlu1 %v831_v40  ;;  %889 = vadd.xlane.f32.xlu0 %v834_v41 }
 0x269   :  { %v796_v48 = vmax.f32 %v742_v42, 0.0  ;;  %v745_v50 = vadd.f32 %v4504_v4, %v744_v46 }
 0x26a   :  { %v799_v49 = vmax.f32 %v753_v45, 0.0  ;;  %v837_v51 = vmul.f32 %v4511_v18, %v798_v44 }
 0x26b   :  { %v797_v53 = vmax.f32 %v745_v50, 0.0  ;;  %v835_v56 = vmul.f32 %v4511_v18, %v796_v48 }
 0x26c   :  { %895 = vadd.xlane.f32.xlu1 %v837_v51  ;;  %885 = vadd.xlane.f32.xlu0 %v832_v47  ;;  %v838_v57 = vmul.f32 %v4511_v18, %v799_v49 }
 0x26d   :  { %v4045_v52 = vpop.f32.mrb[28].mxu1  ;;  %v836_v3 = vmul.f32 %v4511_v18, %v797_v53 }
 0x26e   :  { %v766_v54 = vadd.f32 %v4045_v52, %v4504_v4  ;;  %v757_v55 = vpop.f32.mrb[29].mxu1 }
 0x26f   :  { %v758_v58 = vadd.f32 %v4504_v4, %v757_v55  ;;  %v4046_v59 = vpop.f32.mrb[30].mxu1 }
 0x270   :  { %v802_v60 = vmax.f32 %v766_v54, 0.0  ;;  %v769_v61 = vadd.f32 %v4046_v59, %v4504_v4  ;;  %891 = vadd.xlane.f32.xlu1 %v835_v56  ;;  %897 = vadd.xlane.f32.xlu0 %v838_v57  ;;  %v760_v62 = vpop.f32.mrb[31].mxu1 }
 0x271   :  { %v800_v63 = vmax.f32 %v758_v58, 0.0  ;;  %v761_v0 = vadd.f32 %v4504_v4, %v760_v62  ;;  %v2001_v4 = vunpack.c.l.s4 %v4095_v11 }
 0x272   :  { %v803_v1 = vmax.f32 %v769_v61, 0.0  ;;  %v841_v2 = vmul.f32 %v4511_v18, %v802_v60 }
 0x273   :  { %v801_v5 = vmax.f32 %v761_v0, 0.0  ;;  %v839_v6 = vmul.f32 %v4511_v18, %v800_v63  ;;  %v2002_v14 = vunpack.c.0.s8 %v2001_v4 }
 0x274   :  { %903 = vadd.xlane.f32.xlu1 %v841_v2  ;;  %893 = vadd.xlane.f32.xlu0 %v836_v3  ;;  %v842_v7 = vmul.f32 %v4511_v18, %v803_v1 }
 0x275   :  { %v840_v8 = vmul.f32 %v4511_v18, %v801_v5  ;;  %v4587_v18 = vsub.s32 1, %v4576_v12  ;;  %v4609_v24 = vsub.s32 %v2002_v14, %v4576_v12 }
 0x278   :  { %899 = vadd.xlane.f32.xlu1 %v839_v6  ;;  %901 = vadd.xlane.f32.xlu0 %v840_v8 }
 0x27c   :  { %905 = vadd.xlane.f32.xlu0 %v842_v7 }
 0x2c9   :  { %v848_v17 = vpop.xlane.xlu0 %847 }
 0x2ca   :  { %v910_v22 = vadd.f32 %v4581_v13, %v848_v17 }
 0x2cc   :  { %v846_v25 = vpop.xlane.xlu1 %845  ;;  %v1039_v26 = vrot.slane %v910_v22, %v4584_v15  ;;  %v1043_v27 = vrot.slane %v910_v22, %v4587_v18  ;;  %v1047_v28 = vrot.slane %v910_v22, %v4590_v16  ;;  %v1051_v29 = vrot.slane %v910_v22, %v4593_v10 }
 0x2cd   :  { %v909_v30 = vadd.f32 %v4581_v13, %v846_v25  ;;  %v844_v31 = vpop.xlane.xlu0 %843  ;;  %v1055_v32 = vrot.slane %v910_v22, %v4596_v19  ;;  %v1059_v33 = vrot.slane %v910_v22, %v4599_v20  ;;  %v1063_v34 = vrot.slane %v910_v22, %v4602_v21 }
 0x2ce   :  { %v908_v35 = vadd.f32 %v4581_v13, %v844_v31  ;;  %v1067_v36 = vrot.slane %v910_v22, %v4606_v23  ;;  %v2094_v37 = vcombine.low %v1039_v26, %v1043_v27  ;;  %v2095_v38 = vcombine.low %v1047_v28, %v1051_v29 }
 0x2cf   :  { %v2096_v39 = vcombine.low %v1055_v32, %v1059_v33  ;;  %v1007_v40 = vrot.slane %v909_v30, %v4584_v15  ;;  %v1011_v41 = vrot.slane %v909_v30, %v4587_v18  ;;  %v1015_v42 = vrot.slane %v909_v30, %v4590_v16 }
 0x2d0   :  { %v2097_v43 = vcombine.low %v1063_v34, %v1067_v36  ;;  %v2104_v44 = vrot.slane %v2094_v37, %v4609_v24  ;;  %v2111_v45 = vrot.slane %v2095_v38, %v4609_v24  ;;  %v1019_v46 = vrot.slane %v909_v30, %v4593_v10 }
 0x2d1   :  { %v856_v47 = vpop.xlane.xlu1 %855  ;;  %v850_v48 = vpop.xlane.xlu0 %849  ;;  %v2118_v49 = vrot.slane %v2096_v39, %v4609_v24  ;;  %v1023_v50 = vrot.slane %v909_v30, %v4596_v19  ;;  %v1027_v51 = vrot.slane %v909_v30, %v4599_v20  ;;  %v1031_v52 = vrot.slane %v909_v30, %v4602_v21 }
 0x2d2   :  { %v4632_v53 = vadd.f32 %v4581_v13, %v856_v47  ;;  %v4635_v54 = vadd.f32 %v4581_v13, %v850_v48  ;;  %v2125_v55 = vrot.slane %v2097_v43, %v4609_v24  ;;  %v2126_v56 = vcombine.low %v2104_v44, %v2111_v45 }
 0x2d3   :  { %v1035_v57 = vrot.slane %v909_v30, %v4606_v23  ;;  %v2045_v58 = vcombine.low %v1007_v40, %v1011_v41  ;;  %v2046_v59 = vcombine.low %v1015_v42, %v1019_v46  ;;  %v2047_v60 = vcombine.low %v1023_v50, %v1027_v51 }
 0x2d4   :  { %v2127_v61 = vcombine.low %v2118_v49, %v2125_v55  ;;  %v2134_v62 = vrot.slane %v2126_v56, %v4609_v24  ;;  %v975_v63 = vrot.slane %v908_v35, %v4584_v15  ;;  %v979_v0 = vrot.slane %v908_v35, %v4587_v18 }
 0x2d5   :  { %v852_v1 = vpop.xlane.xlu1 %851  ;;  %v858_v2 = vpop.xlane.xlu0 %857  ;;  %v2048_v3 = vcombine.low %v1031_v52, %v1035_v57  ;;  %v2055_v5 = vrot.slane %v2045_v58, %v4609_v24  ;;  %v2062_v6 = vrot.slane %v2046_v59, %v4609_v24  ;;  %v2069_v7 = vrot.slane %v2047_v60, %v4609_v24 }
 0x2d6   :  { %v4646_v8 = vadd.f32 %v4581_v13, %v852_v1  ;;  %v4649_v11 = vadd.f32 %v4581_v13, %v858_v2  ;;  %v2141_v4 = vrot.slane %v2127_v61, %v4609_v24  ;;  %v983_v14 = vrot.slane %v908_v35, %v4590_v16 }
 0x2d7   :  { %v2076_v17 = vrot.slane %v2048_v3, %v4609_v24  ;;  %v2077_v22 = vcombine.low %v2055_v5, %v2062_v6  ;;  %v987_v25 = vrot.slane %v908_v35, %v4593_v10  ;;  %v991_v26 = vrot.slane %v908_v35, %v4596_v19 }
 0x2d8   :  { %v2142_v27 = vcombine.low %v2134_v62, %v2141_v4  ;;  %v995_v28 = vrot.slane %v908_v35, %v4599_v20  ;;  %v999_v29 = vrot.slane %v908_v35, %v4602_v21  ;;  %v1003_v30 = vrot.slane %v908_v35, %v4606_v23 }
 0x2d9   :  { %v864_v31 = vpop.xlane.xlu1 %863  ;;  %v854_v32 = vpop.xlane.xlu0 %853  ;;  %v2078_v33 = vcombine.low %v2069_v7, %v2076_v17  ;;  %v2085_v34 = vrot.slane %v2077_v22, %v4609_v24  ;;  %v1996_v36 = vcombine.low %v975_v63, %v979_v0  ;;  %v1997_v37 = vcombine.low %v983_v14, %v987_v25 }
 0x2da   :  { %3571 = vperm.xlu1 %4051, %v2142_v27   ;;  %v4661_v38 = vadd.f32 %v4581_v13, %v864_v31  ;;  %v4664_v39 = vadd.f32 %v4581_v13, %v854_v32  ;;  %v1998_v40 = vcombine.low %v991_v26, %v995_v28  ;;  %v1999_v41 = vcombine.low %v999_v29, %v1003_v30 }
 0x2db   :  { %v2092_v42 = vrot.slane %v2078_v33, %v4609_v24  ;;  %v2006_v35 = vrot.slane %v1996_v36, %v4609_v24  ;;  %v2013_v43 = vrot.slane %v1997_v37, %v4609_v24  ;;  %v1071_v44 = vrot.slane %v4635_v54, %v4584_v15 }
 0x2dc   :  { %v2020_v45 = vrot.slane %v1998_v40, %v4609_v24  ;;  %v2027_v46 = vrot.slane %v1999_v41, %v4609_v24  ;;  %v1075_v47 = vrot.slane %v4635_v54, %v4587_v18  ;;  %v1079_v48 = vrot.slane %v4635_v54, %v4590_v16 }
 0x2dd   :  { %v2093_v49 = vcombine.low %v2085_v34, %v2092_v42  ;;  %v2028_v50 = vcombine.low %v2006_v35, %v2013_v43  ;;  %v860_v51 = vpop.xlane.xlu1 %859  ;;  %v866_v52 = vpop.xlane.xlu0 %865  ;;  %v1083_v55 = vrot.slane %v4635_v54, %v4593_v10  ;;  %v1087_v56 = vrot.slane %v4635_v54, %v4596_v19 }
 0x2de   :  { %v2029_v57 = vcombine.low %v2020_v45, %v2027_v46  ;;  %v4682_v58 = vadd.f32 %v4581_v13, %v860_v51  ;;  %v4685_v59 = vadd.f32 %v4581_v13, %v866_v52  ;;  %v1091_v60 = vrot.slane %v4635_v54, %v4599_v20 }
 0x2df   :  { %3568 = vperm.xlu0 %4052, %v2093_v49   ;;  %v2036_v61 = vrot.slane %v2028_v50, %v4609_v24  ;;  %v1095_v62 = vrot.slane %v4635_v54, %v4602_v21  ;;  %v1099_v63 = vrot.slane %v4635_v54, %v4606_v23  ;;  %v2143_v0 = vcombine.low %v1071_v44, %v1075_v47 }
 0x2e0   :  { %v2043_v1 = vrot.slane %v2029_v57, %v4609_v24  ;;  %v2144_v2 = vcombine.low %v1079_v48, %v1083_v55  ;;  %v2145_v3 = vcombine.low %v1087_v56, %v1091_v60  ;;  %v1167_v5 = vrot.slane %v4632_v53, %v4584_v15 }
 0x2e1   :  { %v2146_v6 = vcombine.low %v1095_v62, %v1099_v63  ;;  %v2153_v7 = vrot.slane %v2143_v0, %v4609_v24  ;;  %v872_v4 = vpop.xlane.xlu1 %871  ;;  %v862_v14 = vpop.xlane.xlu0 %861  ;;  %v1171_v17 = vrot.slane %v4632_v53, %v4587_v18  ;;  %v1175_v22 = vrot.slane %v4632_v53, %v4590_v16 }
 0x2e2   :  { %v2044_v54 = vcombine.low %v2036_v61, %v2043_v1  ;;  %v2160_v25 = vrot.slane %v2144_v2, %v4609_v24  ;;  %v2167_v26 = vrot.slane %v2145_v3, %v4609_v24  ;;  %v4705_v27 = vadd.f32 %v4581_v13, %v872_v4 }
 0x2e3   :  { %v2174_v28 = vrot.slane %v2146_v6, %v4609_v24  ;;  %v4709_v29 = vadd.f32 %v4581_v13, %v862_v14  ;;  %v1179_v30 = vrot.slane %v4632_v53, %v4593_v10  ;;  %v1183_v31 = vrot.slane %v4632_v53, %v4596_v19 }
 0x2e4   :  { %3565 = vperm.xlu1 %4051, %v2044_v54   ;;  %v2175_v32 = vcombine.low %v2153_v7, %v2160_v25  ;;  %v1187_v33 = vrot.slane %v4632_v53, %v4599_v20  ;;  %v1191_v34 = vrot.slane %v4632_v53, %v4602_v21  ;;  %v1195_v36 = vrot.slane %v4632_v53, %v4606_v23 }
 0x2e5   :  { %v2176_v37 = vcombine.low %v2167_v26, %v2174_v28  ;;  %v2290_v40 = vcombine.low %v1167_v5, %v1171_v17  ;;  %v2291_v41 = vcombine.low %v1175_v22, %v1179_v30  ;;  %v868_v42 = vpop.xlane.xlu1 %867  ;;  %v874_v35 = vpop.xlane.xlu0 %873  ;;  %v1295_v43 = vrot.slane %v4661_v38, %v4584_v15 }
 0x2e6   :  { %v2183_v44 = vrot.slane %v2175_v32, %v4609_v24  ;;  %v2292_v45 = vcombine.low %v1183_v31, %v1187_v33  ;;  %v2293_v46 = vcombine.low %v1191_v34, %v1195_v36  ;;  %v4725_v47 = vadd.f32 %v4581_v13, %v868_v42 }
 0x2e7   :  { %v2190_v48 = vrot.slane %v2176_v37, %v4609_v24  ;;  %v2300_v49 = vrot.slane %v2290_v40, %v4609_v24  ;;  %v2307_v53 = vrot.slane %v2291_v41, %v4609_v24  ;;  %v4731_v50 = vadd.f32 %v4581_v13, %v874_v35 }
 0x2e8   :  { %v2314_v51 = vrot.slane %v2292_v45, %v4609_v24  ;;  %v2321_v52 = vrot.slane %v2293_v46, %v4609_v24  ;;  %v1299_v55 = vrot.slane %v4661_v38, %v4587_v18  ;;  %v1303_v56 = vrot.slane %v4661_v38, %v4590_v16 }
 0x2e9   :  { %v2191_v57 = vcombine.low %v2183_v44, %v2190_v48  ;;  %v2322_v60 = vcombine.low %v2300_v49, %v2307_v53  ;;  %v1307_v61 = vrot.slane %v4661_v38, %v4593_v10  ;;  %v1311_v62 = vrot.slane %v4661_v38, %v4596_v19  ;;  %v880_v28 = vpop.xlane.xlu1 %879  ;;  %v870_v34 = vpop.xlane.xlu0 %869 }
 0x2ea   :  { %v2323_v63 = vcombine.low %v2314_v51, %v2321_v52  ;;  %v1315_v0 = vrot.slane %v4661_v38, %v4599_v20  ;;  %v1319_v1 = vrot.slane %v4661_v38, %v4602_v21  ;;  %v1323_v2 = vrot.slane %v4661_v38, %v4606_v23 }
 0x2eb   :  { %3574 = vperm.xlu1 %4051, %v2191_v57   ;;  %v2330_v3 = vrot.slane %v2322_v60, %v4609_v24  ;;  %v2486_v5 = vcombine.low %v1295_v43, %v1299_v55  ;;  %v2487_v6 = vcombine.low %v1303_v56, %v1307_v61  ;;  %v1103_v7 = vrot.slane %v4646_v8, %v4584_v15 }
 0x2ec   :  { %v2337_v4 = vrot.slane %v2323_v63, %v4609_v24  ;;  %v2488_v14 = vcombine.low %v1311_v62, %v1315_v0  ;;  %v2489_v17 = vcombine.low %v1319_v1, %v1323_v2  ;;  %v1107_v22 = vrot.slane %v4646_v8, %v4587_v18 }
 0x2ed   :  { %v2496_v54 = vrot.slane %v2486_v5, %v4609_v24  ;;  %v2503_v25 = vrot.slane %v2487_v6, %v4609_v24  ;;  %v1111_v38 = vrot.slane %v4646_v8, %v4590_v16  ;;  %v1115_v26 = vrot.slane %v4646_v8, %v4593_v10 }
 0x2ee   :  { %v2338_v30 = vcombine.low %v2330_v3, %v2337_v4  ;;  %v2510_v31 = vrot.slane %v2488_v14, %v4609_v24  ;;  %v2517_v32 = vrot.slane %v2489_v17, %v4609_v24  ;;  %v1119_v33 = vrot.slane %v4646_v8, %v4596_v19 }
 0x2ef   :  { %v2518_v36 = vcombine.low %v2496_v54, %v2503_v25  ;;  %v1123_v37 = vrot.slane %v4646_v8, %v4599_v20  ;;  %v1127_v40 = vrot.slane %v4646_v8, %v4602_v21  ;;  %v1131_v41 = vrot.slane %v4646_v8, %v4606_v23 }
 0x2f0   :  { %3583 = vperm.xlu1 %4051, %v2338_v30   ;;  %v2519_v42 = vcombine.low %v2510_v31, %v2517_v32  ;;  %v2192_v35 = vcombine.low %v1103_v7, %v1107_v22  ;;  %v2193_v43 = vcombine.low %v1111_v38, %v1115_v26  ;;  %v4772_v44 = vadd.f32 %v4581_v13, %v880_v28  ;;  %v876_v30 = vpop.xlane.xlu1 %875 }
 0x2f1   :  { %v2526_v45 = vrot.slane %v2518_v36, %v4609_v24  ;;  %v2194_v46 = vcombine.low %v1119_v33, %v1123_v37  ;;  %v2195_v48 = vcombine.low %v1127_v40, %v1131_v41  ;;  %v4776_v49 = vadd.f32 %v4581_v13, %v870_v34  ;;  %v882_v36 = vpop.xlane.xlu0 %881 }
 0x2f2   :  { %v2533_v53 = vrot.slane %v2519_v42, %v4609_v24  ;;  %v2202_v51 = vrot.slane %v2192_v35, %v4609_v24  ;;  %v2209_v8 = vrot.slane %v2193_v43, %v4609_v24  ;;  %v1199_v52 = vrot.slane %v4649_v11, %v4584_v15 }
 0x2f3   :  { %v2216_v55 = vrot.slane %v2194_v46, %v4609_v24  ;;  %v2223_v56 = vrot.slane %v2195_v48, %v4609_v24  ;;  %v1203_v57 = vrot.slane %v4649_v11, %v4587_v18  ;;  %v1207_v60 = vrot.slane %v4649_v11, %v4590_v16 }
 0x2f4   :  { %v2534_v61 = vcombine.low %v2526_v45, %v2533_v53  ;;  %v2224_v62 = vcombine.low %v2202_v51, %v2209_v8  ;;  %v1211_v63 = vrot.slane %v4649_v11, %v4593_v10  ;;  %v1215_v0 = vrot.slane %v4649_v11, %v4596_v19 }
 0x2f5   :  { %v2225_v1 = vcombine.low %v2216_v55, %v2223_v56  ;;  %v1219_v2 = vrot.slane %v4649_v11, %v4599_v20  ;;  %v1223_v3 = vrot.slane %v4649_v11, %v4602_v21  ;;  %v1227_v5 = vrot.slane %v4649_v11, %v4606_v23 }
 0x2f6   :  { %3595 = vperm.xlu0 %4052, %v2534_v61   ;;  %v2232_v6 = vrot.slane %v2224_v62, %v4609_v24  ;;  %v2339_v7 = vcombine.low %v1199_v52, %v1203_v57  ;;  %v2340_v4 = vcombine.low %v1207_v60, %v1211_v63  ;;  %v1327_v14 = vrot.slane %v4685_v59, %v4584_v15  ;;  %v888_v63 = vpop.xlane.xlu1 %887 }
 0x2f7   :  { %v2239_v17 = vrot.slane %v2225_v1, %v4609_v24  ;;  %v2341_v22 = vcombine.low %v1215_v0, %v1219_v2  ;;  %v2342_v54 = vcombine.low %v1223_v3, %v1227_v5  ;;  %v1331_v25 = vrot.slane %v4685_v59, %v4587_v18  ;;  %v878_v5 = vpop.xlane.xlu0 %877 }
 0x2f8   :  { %v2349_v38 = vrot.slane %v2339_v7, %v4609_v24  ;;  %v2356_v26 = vrot.slane %v2340_v4, %v4609_v24  ;;  %v1335_v11 = vrot.slane %v4685_v59, %v4590_v16  ;;  %v1339_v28 = vrot.slane %v4685_v59, %v4593_v10 }
 0x2f9   :  { %v2240_v31 = vcombine.low %v2232_v6, %v2239_v17  ;;  %v2363_v32 = vrot.slane %v2341_v22, %v4609_v24  ;;  %v2370_v33 = vrot.slane %v2342_v54, %v4609_v24  ;;  %v1343_v34 = vrot.slane %v4685_v59, %v4596_v19 }
 0x2fa   :  { %v2371_v37 = vcombine.low %v2349_v38, %v2356_v26  ;;  %v1347_v40 = vrot.slane %v4685_v59, %v4599_v20  ;;  %v1351_v41 = vrot.slane %v4685_v59, %v4602_v21  ;;  %v1355_v42 = vrot.slane %v4685_v59, %v4606_v23 }
 0x2fb   :  { %3577 = vperm.xlu1 %4051, %v2240_v31   ;;  %v2372_v35 = vcombine.low %v2363_v32, %v2370_v33  ;;  %v2535_v43 = vcombine.low %v1327_v14, %v1331_v25  ;;  %v2536_v45 = vcombine.low %v1335_v11, %v1339_v28  ;;  %v4822_v46 = vadd.f32 %v4581_v13, %v876_v30 }
 0x2fc   :  { %v2379_v48 = vrot.slane %v2371_v37, %v4609_v24  ;;  %v2537_v53 = vcombine.low %v1343_v34, %v1347_v40  ;;  %v2538_v51 = vcombine.low %v1351_v41, %v1355_v42  ;;  %v4826_v8 = vadd.f32 %v4581_v13, %v882_v36 }
 0x2fd   :  { %v2386_v52 = vrot.slane %v2372_v35, %v4609_v24  ;;  %v2545_v55 = vrot.slane %v2535_v43, %v4609_v24  ;;  %v2552_v59 = vrot.slane %v2536_v45, %v4609_v24  ;;  %v1135_v56 = vrot.slane %v4664_v39, %v4584_v15 }
 0x2fe   :  { %v2559_v57 = vrot.slane %v2537_v53, %v4609_v24  ;;  %v2566_v60 = vrot.slane %v2538_v51, %v4609_v24  ;;  %v1139_v61 = vrot.slane %v4664_v39, %v4587_v18  ;;  %v1143_v62 = vrot.slane %v4664_v39, %v4590_v16 }
 0x2ff   :  { %v2387_v0 = vcombine.low %v2379_v48, %v2386_v52  ;;  %v2567_v1 = vcombine.low %v2545_v55, %v2552_v59  ;;  %v1147_v2 = vrot.slane %v4664_v39, %v4593_v10  ;;  %v1151_v3 = vrot.slane %v4664_v39, %v4596_v19 }
 0x300   :  { %v2568_v6 = vcombine.low %v2559_v57, %v2566_v60  ;;  %v1155_v7 = vrot.slane %v4664_v39, %v4599_v20  ;;  %v1159_v4 = vrot.slane %v4664_v39, %v4602_v21  ;;  %v1163_v14 = vrot.slane %v4664_v39, %v4606_v23 }
 0x301   :  { %3586 = vperm.xlu1 %4051, %v2387_v0   ;;  %v2575_v17 = vrot.slane %v2567_v1, %v4609_v24  ;;  %v2241_v22 = vcombine.low %v1135_v56, %v1139_v61  ;;  %v2242_v54 = vcombine.low %v1143_v62, %v1147_v2  ;;  %v4851_v25 = vadd.f32 %v4581_v13, %v888_v63  ;;  %v884_v1 = vpop.xlane.xlu1 %883 }
 0x302   :  { %v2582_v38 = vrot.slane %v2568_v6, %v4609_v24  ;;  %v2243_v26 = vcombine.low %v1151_v3, %v1155_v7  ;;  %v2244_v11 = vcombine.low %v1159_v4, %v1163_v14  ;;  %v4855_v28 = vadd.f32 %v4581_v13, %v878_v5  ;;  %v890_v7 = vpop.xlane.xlu0 %889 }
 0x303   :  { %v2251_v30 = vrot.slane %v2241_v22, %v4609_v24  ;;  %v2258_v31 = vrot.slane %v2242_v54, %v4609_v24  ;;  %v1231_v39 = vrot.slane %v4682_v58, %v4584_v15  ;;  %v1235_v32 = vrot.slane %v4682_v58, %v4587_v18 }
 0x304   :  { %v2583_v33 = vcombine.low %v2575_v17, %v2582_v38  ;;  %v2265_v34 = vrot.slane %v2243_v26, %v4609_v24  ;;  %v2272_v36 = vrot.slane %v2244_v11, %v4609_v24  ;;  %v1239_v37 = vrot.slane %v4682_v58, %v4590_v16 }
 0x305   :  { %v2273_v40 = vcombine.low %v2251_v30, %v2258_v31  ;;  %v1243_v41 = vrot.slane %v4682_v58, %v4593_v10  ;;  %v1247_v42 = vrot.slane %v4682_v58, %v4596_v19  ;;  %v1251_v35 = vrot.slane %v4682_v58, %v4599_v20 }
 0x306   :  { %3598 = vperm.xlu0 %4052, %v2583_v33   ;;  %v2274_v43 = vcombine.low %v2265_v34, %v2272_v36  ;;  %v1255_v45 = vrot.slane %v4682_v58, %v4602_v21  ;;  %v1259_v48 = vrot.slane %v4682_v58, %v4606_v23  ;;  %v2388_v53 = vcombine.low %v1231_v39, %v1235_v32 }
 0x307   :  { %v2281_v51 = vrot.slane %v2273_v40, %v4609_v24  ;;  %v2389_v52 = vcombine.low %v1239_v37, %v1243_v41  ;;  %v2390_v55 = vcombine.low %v1247_v42, %v1251_v35  ;;  %v1359_v59 = vrot.slane %v4725_v47, %v4584_v15 }
 0x308   :  { %v2288_v56 = vrot.slane %v2274_v43, %v4609_v24  ;;  %v2391_v57 = vcombine.low %v1255_v45, %v1259_v48  ;;  %v2398_v60 = vrot.slane %v2388_v53, %v4609_v24  ;;  %v1363_v61 = vrot.slane %v4725_v47, %v4587_v18 }
 0x309   :  { %v2405_v62 = vrot.slane %v2389_v52, %v4609_v24  ;;  %v2412_v58 = vrot.slane %v2390_v55, %v4609_v24  ;;  %v1367_v63 = vrot.slane %v4725_v47, %v4590_v16  ;;  %v1371_v0 = vrot.slane %v4725_v47, %v4593_v10 }
 0x30a   :  { %v2289_v2 = vcombine.low %v2281_v51, %v2288_v56  ;;  %v2419_v3 = vrot.slane %v2391_v57, %v4609_v24  ;;  %v1375_v5 = vrot.slane %v4725_v47, %v4596_v19  ;;  %v1379_v6 = vrot.slane %v4725_v47, %v4599_v20 }
 0x30b   :  { %v2420_v4 = vcombine.low %v2398_v60, %v2405_v62  ;;  %v1383_v14 = vrot.slane %v4725_v47, %v4602_v21  ;;  %v1387_v17 = vrot.slane %v4725_v47, %v4606_v23  ;;  %v2584_v22 = vcombine.low %v1359_v59, %v1363_v61 }
 0x30c   :  { %3580 = vperm.xlu1 %4051, %v2289_v2   ;;  %v2421_v54 = vcombine.low %v2412_v58, %v2419_v3  ;;  %v2585_v38 = vcombine.low %v1367_v63, %v1371_v0  ;;  %v2586_v26 = vcombine.low %v1375_v5, %v1379_v6  ;;  %v4900_v11 = vadd.f32 %v4581_v13, %v884_v1  ;;  %v896_v3 = vpop.xlane.xlu1 %895 }
 0x30d   :  { %v2428_v30 = vrot.slane %v2420_v4, %v4609_v24  ;;  %v2587_v31 = vcombine.low %v1383_v14, %v1387_v17  ;;  %v2594_v39 = vrot.slane %v2584_v22, %v4609_v24  ;;  %v4905_v32 = vadd.f32 %v4581_v13, %v890_v7  ;;  %v886_v14 = vpop.xlane.xlu0 %885 }
 0x30e   :  { %v2435_v33 = vrot.slane %v2421_v54, %v4609_v24  ;;  %v2601_v47 = vrot.slane %v2585_v38, %v4609_v24  ;;  %v2608_v34 = vrot.slane %v2586_v26, %v4609_v24  ;;  %v1263_v36 = vrot.slane %v4709_v29, %v4584_v15 }
 0x30f   :  { %v2615_v37 = vrot.slane %v2587_v31, %v4609_v24  ;;  %v1267_v40 = vrot.slane %v4709_v29, %v4587_v18  ;;  %v1271_v41 = vrot.slane %v4709_v29, %v4590_v16  ;;  %v1275_v42 = vrot.slane %v4709_v29, %v4593_v10 }
 0x310   :  { %v2436_v35 = vcombine.low %v2428_v30, %v2435_v33  ;;  %v2616_v43 = vcombine.low %v2594_v39, %v2601_v47  ;;  %v1279_v45 = vrot.slane %v4709_v29, %v4596_v19  ;;  %v1283_v48 = vrot.slane %v4709_v29, %v4599_v20 }
 0x311   :  { %v2617_v53 = vcombine.low %v2608_v34, %v2615_v37  ;;  %v1287_v51 = vrot.slane %v4709_v29, %v4602_v21  ;;  %v1291_v52 = vrot.slane %v4709_v29, %v4606_v23  ;;  %v2437_v55 = vcombine.low %v1263_v36, %v1267_v40 }
 0x312   :  { %3589 = vperm.xlu1 %4051, %v2436_v35   ;;  %v2624_v59 = vrot.slane %v2616_v43, %v4609_v24  ;;  %v2438_v56 = vcombine.low %v1271_v41, %v1275_v42  ;;  %v2439_v57 = vcombine.low %v1279_v45, %v1283_v48  ;;  %v1391_v60 = vrot.slane %v4776_v49, %v4584_v15 }
 0x313   :  { %v2631_v61 = vrot.slane %v2617_v53, %v4609_v24  ;;  %v2440_v62 = vcombine.low %v1287_v51, %v1291_v52  ;;  %v2447_v58 = vrot.slane %v2437_v55, %v4609_v24  ;;  %v1395_v63 = vrot.slane %v4776_v49, %v4587_v18 }
 0x314   :  { %v2454_v0 = vrot.slane %v2438_v56, %v4609_v24  ;;  %v2461_v29 = vrot.slane %v2439_v57, %v4609_v24  ;;  %v1399_v1 = vrot.slane %v4776_v49, %v4590_v16  ;;  %v1403_v2 = vrot.slane %v4776_v49, %v4593_v10 }
 0x315   :  { %v2632_v5 = vcombine.low %v2624_v59, %v2631_v61  ;;  %v2468_v6 = vrot.slane %v2440_v62, %v4609_v24  ;;  %v1407_v7 = vrot.slane %v4776_v49, %v4596_v19  ;;  %v1411_v4 = vrot.slane %v4776_v49, %v4599_v20 }
 0x316   :  { %v2469_v17 = vcombine.low %v2447_v58, %v2454_v0  ;;  %v1415_v22 = vrot.slane %v4776_v49, %v4602_v21  ;;  %v1419_v54 = vrot.slane %v4776_v49, %v4606_v23  ;;  %v2633_v38 = vcombine.low %v1391_v60, %v1395_v63 }
 0x317   :  { %3601 = vperm.xlu0 %4052, %v2632_v5   ;;  %v2470_v26 = vcombine.low %v2461_v29, %v2468_v6  ;;  %v2634_v30 = vcombine.low %v1399_v1, %v1403_v2  ;;  %v2635_v31 = vcombine.low %v1407_v7, %v1411_v4  ;;  %v4950_v39 = vadd.f32 %v4581_v13, %v896_v3  ;;  %v892_v6 = vpop.xlane.xlu1 %891 }
 0x318   :  { %v2477_v33 = vrot.slane %v2469_v17, %v4609_v24  ;;  %v2636_v47 = vcombine.low %v1415_v22, %v1419_v54  ;;  %v2643_v34 = vrot.slane %v2633_v38, %v4609_v24  ;;  %v4955_v36 = vadd.f32 %v4581_v13, %v886_v14  ;;  %v898_v22 = vpop.xlane.xlu0 %897 }
 0x319   :  { %v2484_v37 = vrot.slane %v2470_v26, %v4609_v24  ;;  %v2650_v49 = vrot.slane %v2634_v30, %v4609_v24  ;;  %v2657_v40 = vrot.slane %v2635_v31, %v4609_v24  ;;  %v1551_v41 = vrot.slane %v4772_v44, %v4584_v15 }
 0x31a   :  { %v2664_v42 = vrot.slane %v2636_v47, %v4609_v24  ;;  %v1555_v35 = vrot.slane %v4772_v44, %v4587_v18  ;;  %v1559_v43 = vrot.slane %v4772_v44, %v4590_v16  ;;  %v1563_v45 = vrot.slane %v4772_v44, %v4593_v10 }
 0x31b   :  { %v2485_v48 = vcombine.low %v2477_v33, %v2484_v37  ;;  %v2665_v53 = vcombine.low %v2643_v34, %v2650_v49  ;;  %v1567_v51 = vrot.slane %v4772_v44, %v4596_v19  ;;  %v1571_v52 = vrot.slane %v4772_v44, %v4599_v20 }
 0x31c   :  { %v2666_v55 = vcombine.low %v2657_v40, %v2664_v42  ;;  %v1575_v59 = vrot.slane %v4772_v44, %v4602_v21  ;;  %v1579_v56 = vrot.slane %v4772_v44, %v4606_v23  ;;  %v2878_v57 = vcombine.low %v1551_v41, %v1555_v35 }
 0x31d   :  { %3592 = vperm.xlu1 %4051, %v2485_v48   ;;  %v2673_v60 = vrot.slane %v2665_v53, %v4609_v24  ;;  %v2879_v61 = vcombine.low %v1559_v43, %v1563_v45  ;;  %v2880_v62 = vcombine.low %v1567_v51, %v1571_v52  ;;  %v1583_v58 = vrot.slane %v4826_v8, %v4584_v15 }
 0x31e   :  { %v2680_v63 = vrot.slane %v2666_v55, %v4609_v24  ;;  %v2881_v0 = vcombine.low %v1575_v59, %v1579_v56  ;;  %v2888_v29 = vrot.slane %v2878_v57, %v4609_v24  ;;  %v1587_v1 = vrot.slane %v4826_v8, %v4587_v18 }
 0x31f   :  { %v2895_v2 = vrot.slane %v2879_v61, %v4609_v24  ;;  %v2902_v44 = vrot.slane %v2880_v62, %v4609_v24  ;;  %v1591_v3 = vrot.slane %v4826_v8, %v4590_v16  ;;  %v1595_v5 = vrot.slane %v4826_v8, %v4593_v10 }
 0x320   :  { %v2681_v7 = vcombine.low %v2673_v60, %v2680_v63  ;;  %v2909_v4 = vrot.slane %v2881_v0, %v4609_v24  ;;  %v1599_v14 = vrot.slane %v4826_v8, %v4596_v19  ;;  %v1603_v17 = vrot.slane %v4826_v8, %v4599_v20 }
 0x321   :  { %v2910_v54 = vcombine.low %v2888_v29, %v2895_v2  ;;  %v1607_v38 = vrot.slane %v4826_v8, %v4602_v21  ;;  %v1611_v26 = vrot.slane %v4826_v8, %v4606_v23  ;;  %v2927_v30 = vcombine.low %v1583_v58, %v1587_v1 }
 0x322   :  { %3604 = vperm.xlu0 %4052, %v2681_v7   ;;  %v2911_v31 = vcombine.low %v2902_v44, %v2909_v4  ;;  %v2928_v33 = vcombine.low %v1591_v3, %v1595_v5  ;;  %v2929_v47 = vcombine.low %v1599_v14, %v1603_v17  ;;  %v5000_v34 = vadd.f32 %v4581_v13, %v892_v6 }
 0x323   :  { %v2918_v37 = vrot.slane %v2910_v54, %v4609_v24  ;;  %v2930_v49 = vcombine.low %v1607_v38, %v1611_v26  ;;  %v2937_v40 = vrot.slane %v2927_v30, %v4609_v24  ;;  %v5005_v41 = vadd.f32 %v4581_v13, %v898_v22  ;;  %v894_v54 = vpop.xlane.xlu0 %893 }
 0x324   :  { %v2925_v42 = vrot.slane %v2911_v31, %v4609_v24  ;;  %v2944_v8 = vrot.slane %v2928_v33, %v4609_v24  ;;  %v2951_v35 = vrot.slane %v2929_v47, %v4609_v24  ;;  %v1487_v43 = vrot.slane %v4822_v46, %v4584_v15  ;;  %v904_v33 = vpop.xlane.xlu1 %903 }
 0x325   :  { %v2958_v45 = vrot.slane %v2930_v49, %v4609_v24  ;;  %v1491_v48 = vrot.slane %v4822_v46, %v4587_v18  ;;  %v1495_v53 = vrot.slane %v4822_v46, %v4590_v16  ;;  %v1499_v51 = vrot.slane %v4822_v46, %v4593_v10 }
 0x326   :  { %v2926_v52 = vcombine.low %v2918_v37, %v2925_v42  ;;  %v2959_v55 = vcombine.low %v2937_v40, %v2944_v8  ;;  %v1503_v59 = vrot.slane %v4822_v46, %v4596_v19  ;;  %v1507_v56 = vrot.slane %v4822_v46, %v4599_v20 }
 0x327   :  { %v2960_v57 = vcombine.low %v2951_v35, %v2958_v45  ;;  %v1511_v60 = vrot.slane %v4822_v46, %v4602_v21  ;;  %v1515_v61 = vrot.slane %v4822_v46, %v4606_v23  ;;  %v2780_v62 = vcombine.low %v1487_v43, %v1491_v48 }
 0x328   :  { %3619 = vperm.xlu0 %4052, %v2926_v52   ;;  %v2967_v58 = vrot.slane %v2959_v55, %v4609_v24  ;;  %v2781_v63 = vcombine.low %v1495_v53, %v1499_v51  ;;  %v2782_v0 = vcombine.low %v1503_v59, %v1507_v56  ;;  %v1519_v29 = vrot.slane %v4855_v28, %v4584_v15 }
 0x329   :  { %v2974_v1 = vrot.slane %v2960_v57, %v4609_v24  ;;  %v2783_v2 = vcombine.low %v1511_v60, %v1515_v61  ;;  %v2790_v44 = vrot.slane %v2780_v62, %v4609_v24  ;;  %v1523_v3 = vrot.slane %v4855_v28, %v4587_v18 }
 0x32a   :  { %v2797_v5 = vrot.slane %v2781_v63, %v4609_v24  ;;  %v2804_v46 = vrot.slane %v2782_v0, %v4609_v24  ;;  %v1527_v6 = vrot.slane %v4855_v28, %v4590_v16  ;;  %v1531_v7 = vrot.slane %v4855_v28, %v4593_v10 }
 0x32b   :  { %v2975_v4 = vcombine.low %v2967_v58, %v2974_v1  ;;  %v2811_v14 = vrot.slane %v2783_v2, %v4609_v24  ;;  %v1535_v17 = vrot.slane %v4855_v28, %v4596_v19  ;;  %v1539_v22 = vrot.slane %v4855_v28, %v4599_v20 }
 0x32c   :  { %v2812_v38 = vcombine.low %v2790_v44, %v2797_v5  ;;  %v1543_v26 = vrot.slane %v4855_v28, %v4602_v21  ;;  %v1547_v30 = vrot.slane %v4855_v28, %v4606_v23  ;;  %v2829_v31 = vcombine.low %v1519_v29, %v1523_v3 }
 0x32d   :  { %3622 = vperm.xlu1 %4051, %v2975_v4   ;;  %v2813_v47 = vcombine.low %v2804_v46, %v2811_v14  ;;  %v2830_v37 = vcombine.low %v1527_v6, %v1531_v7  ;;  %v2831_v49 = vcombine.low %v1535_v17, %v1539_v22  ;;  %v5050_v40 = vadd.f32 %v4581_v13, %v904_v33  ;;  %v900_v17 = vpop.xlane.xlu1 %899 }
 0x32e   :  { %v2820_v42 = vrot.slane %v2812_v38, %v4609_v24  ;;  %v2832_v8 = vcombine.low %v1543_v26, %v1547_v30  ;;  %v2839_v35 = vrot.slane %v2829_v31, %v4609_v24  ;;  %v5055_v43 = vadd.f32 %v4581_v13, %v894_v54  ;;  %v902_v30 = vpop.xlane.xlu0 %901 }
 0x32f   :  { %v2827_v45 = vrot.slane %v2813_v47, %v4609_v24  ;;  %v2846_v28 = vrot.slane %v2830_v37, %v4609_v24  ;;  %v2853_v48 = vrot.slane %v2831_v49, %v4609_v24  ;;  %v1679_v53 = vrot.slane %v4851_v25, %v4584_v15 }
 0x330   :  { %v2860_v51 = vrot.slane %v2832_v8, %v4609_v24  ;;  %v1683_v52 = vrot.slane %v4851_v25, %v4587_v18  ;;  %v1687_v55 = vrot.slane %v4851_v25, %v4590_v16  ;;  %v1691_v59 = vrot.slane %v4851_v25, %v4593_v10 }
 0x331   :  { %v2828_v56 = vcombine.low %v2820_v42, %v2827_v45  ;;  %v2861_v57 = vcombine.low %v2839_v35, %v2846_v28  ;;  %v1695_v60 = vrot.slane %v4851_v25, %v4596_v19  ;;  %v1699_v61 = vrot.slane %v4851_v25, %v4599_v20 }
 0x332   :  { %v2862_v62 = vcombine.low %v2853_v48, %v2860_v51  ;;  %v1703_v58 = vrot.slane %v4851_v25, %v4602_v21  ;;  %v1707_v63 = vrot.slane %v4851_v25, %v4606_v23  ;;  %v3074_v0 = vcombine.low %v1679_v53, %v1683_v52 }
 0x333   :  { %3613 = vperm.xlu0 %4052, %v2828_v56   ;;  %v2869_v29 = vrot.slane %v2861_v57, %v4609_v24  ;;  %v3075_v1 = vcombine.low %v1687_v55, %v1691_v59  ;;  %v3076_v2 = vcombine.low %v1695_v60, %v1699_v61  ;;  %v1711_v44 = vrot.slane %v4905_v32, %v4584_v15 }
 0x334   :  { %v2876_v3 = vrot.slane %v2862_v62, %v4609_v24  ;;  %v3077_v5 = vcombine.low %v1703_v58, %v1707_v63  ;;  %v3084_v46 = vrot.slane %v3074_v0, %v4609_v24  ;;  %v1715_v6 = vrot.slane %v4905_v32, %v4587_v18 }
 0x335   :  { %v3091_v7 = vrot.slane %v3075_v1, %v4609_v24  ;;  %v3098_v25 = vrot.slane %v3076_v2, %v4609_v24  ;;  %v1719_v4 = vrot.slane %v4905_v32, %v4590_v16  ;;  %v1723_v14 = vrot.slane %v4905_v32, %v4593_v10 }
 0x336   :  { %v2877_v22 = vcombine.low %v2869_v29, %v2876_v3  ;;  %v3105_v54 = vrot.slane %v3077_v5, %v4609_v24  ;;  %v1727_v38 = vrot.slane %v4905_v32, %v4596_v19  ;;  %v1731_v26 = vrot.slane %v4905_v32, %v4599_v20 }
 0x337   :  { %v3106_v31 = vcombine.low %v3084_v46, %v3091_v7  ;;  %v1735_v33 = vrot.slane %v4905_v32, %v4602_v21  ;;  %v1739_v47 = vrot.slane %v4905_v32, %v4606_v23  ;;  %v3123_v37 = vcombine.low %v1711_v44, %v1715_v6 }
 0x338   :  { %3616 = vperm.xlu1 %4051, %v2877_v22   ;;  %v3107_v49 = vcombine.low %v3098_v25, %v3105_v54  ;;  %v3124_v42 = vcombine.low %v1719_v4, %v1723_v14  ;;  %v3125_v8 = vcombine.low %v1727_v38, %v1731_v26  ;;  %v5100_v35 = vadd.f32 %v4581_v13, %v900_v17  ;;  %v906_v54 = vpop.xlane.xlu0 %905 }
 0x339   :  { %v3114_v45 = vrot.slane %v3106_v31, %v4609_v24  ;;  %v3126_v28 = vcombine.low %v1735_v33, %v1739_v47  ;;  %v3133_v48 = vrot.slane %v3123_v37, %v4609_v24  ;;  %v5105_v53 = vadd.f32 %v4581_v13, %v902_v30 }
 0x33a   :  { %v3121_v51 = vrot.slane %v3107_v49, %v4609_v24  ;;  %v3140_v32 = vrot.slane %v3124_v42, %v4609_v24  ;;  %v3147_v52 = vrot.slane %v3125_v8, %v4609_v24  ;;  %v1615_v55 = vrot.slane %v4900_v11, %v4584_v15 }
 0x33b   :  { %v3154_v59 = vrot.slane %v3126_v28, %v4609_v24  ;;  %v1619_v56 = vrot.slane %v4900_v11, %v4587_v18  ;;  %v1623_v57 = vrot.slane %v4900_v11, %v4590_v16  ;;  %v1627_v60 = vrot.slane %v4900_v11, %v4593_v10 }
 0x33c   :  { %v3122_v61 = vcombine.low %v3114_v45, %v3121_v51  ;;  %v3155_v62 = vcombine.low %v3133_v48, %v3140_v32  ;;  %v1631_v58 = vrot.slane %v4900_v11, %v4596_v19  ;;  %v1635_v63 = vrot.slane %v4900_v11, %v4599_v20 }
 0x33d   :  { %v3156_v0 = vcombine.low %v3147_v52, %v3154_v59  ;;  %v1639_v29 = vrot.slane %v4900_v11, %v4602_v21  ;;  %v1643_v1 = vrot.slane %v4900_v11, %v4606_v23  ;;  %v2976_v2 = vcombine.low %v1615_v55, %v1619_v56 }
 0x33e   :  { %3631 = vperm.xlu0 %4052, %v3122_v61   ;;  %v3163_v44 = vrot.slane %v3155_v62, %v4609_v24  ;;  %v2977_v3 = vcombine.low %v1623_v57, %v1627_v60  ;;  %v2978_v5 = vcombine.low %v1631_v58, %v1635_v63  ;;  %v1647_v46 = vrot.slane %v4955_v36, %v4584_v15 }
 0x33f   :  { %v3170_v6 = vrot.slane %v3156_v0, %v4609_v24  ;;  %v2979_v7 = vcombine.low %v1639_v29, %v1643_v1  ;;  %v2986_v25 = vrot.slane %v2976_v2, %v4609_v24  ;;  %v1651_v4 = vrot.slane %v4955_v36, %v4587_v18 }
 0x340   :  { %v2993_v14 = vrot.slane %v2977_v3, %v4609_v24  ;;  %v3000_v11 = vrot.slane %v2978_v5, %v4609_v24  ;;  %v1655_v17 = vrot.slane %v4955_v36, %v4590_v16  ;;  %v1659_v22 = vrot.slane %v4955_v36, %v4593_v10 }
 0x341   :  { %v3171_v38 = vcombine.low %v3163_v44, %v3170_v6  ;;  %v3007_v26 = vrot.slane %v2979_v7, %v4609_v24  ;;  %v1663_v30 = vrot.slane %v4955_v36, %v4596_v19  ;;  %v1667_v31 = vrot.slane %v4955_v36, %v4599_v20 }
 0x342   :  { %v3008_v33 = vcombine.low %v2986_v25, %v2993_v14  ;;  %v1671_v47 = vrot.slane %v4955_v36, %v4602_v21  ;;  %v1675_v37 = vrot.slane %v4955_v36, %v4606_v23  ;;  %v3025_v49 = vcombine.low %v1647_v46, %v1651_v4 }
 0x343   :  { %3634 = vperm.xlu1 %4051, %v3171_v38   ;;  %v3009_v42 = vcombine.low %v3000_v11, %v3007_v26  ;;  %v3026_v8 = vcombine.low %v1655_v17, %v1659_v22  ;;  %v3027_v45 = vcombine.low %v1663_v30, %v1667_v31  ;;  %v5150_v28 = vadd.f32 %v4581_v13, %v906_v54 }
 0x344   :  { %v3016_v48 = vrot.slane %v3008_v33, %v4609_v24  ;;  %v3028_v51 = vcombine.low %v1671_v47, %v1675_v37  ;;  %v3035_v32 = vrot.slane %v3025_v49, %v4609_v24  ;;  %v1743_v52 = vrot.slane %v5000_v34, %v4584_v15 }
 0x345   :  { %v3023_v55 = vrot.slane %v3009_v42, %v4609_v24  ;;  %v3042_v36 = vrot.slane %v3026_v8, %v4609_v24  ;;  %v3049_v59 = vrot.slane %v3027_v45, %v4609_v24  ;;  %v1747_v56 = vrot.slane %v5000_v34, %v4587_v18 }
 0x346   :  { %v3056_v13 = vrot.slane %v3028_v51, %v4609_v24  ;;  %v1751_v57 = vrot.slane %v5000_v34, %v4590_v16  ;;  %v1755_v60 = vrot.slane %v5000_v34, %v4593_v10  ;;  %v1759_v61 = vrot.slane %v5000_v34, %v4596_v19 }
 0x347   :  { %v3024_v62 = vcombine.low %v3016_v48, %v3023_v55  ;;  %v3057_v58 = vcombine.low %v3035_v32, %v3042_v36  ;;  %v1763_v63 = vrot.slane %v5000_v34, %v4599_v20  ;;  %v1767_v0 = vrot.slane %v5000_v34, %v4602_v21 }
 0x348   :  { %v3058_v29 = vcombine.low %v3049_v59, %v3056_v13  ;;  %v1771_v1 = vrot.slane %v5000_v34, %v4606_v23  ;;  %v3172_v2 = vcombine.low %v1743_v52, %v1747_v56  ;;  %v3173_v44 = vcombine.low %v1751_v57, %v1755_v60 }
 0x349   :  { %3625 = vperm.xlu0 %4052, %v3024_v62   ;;  %v3065_v3 = vrot.slane %v3057_v58, %v4609_v24  ;;  %v3174_v5 = vcombine.low %v1759_v61, %v1763_v63  ;;  %v1807_v46 = vrot.slane %v4950_v39, %v4584_v15  ;;  %v1811_v6 = vrot.slane %v4950_v39, %v4587_v18 }
 0x34a   :  { %v3072_v7 = vrot.slane %v3058_v29, %v4609_v24  ;;  %v3175_v25 = vcombine.low %v1767_v0, %v1771_v1  ;;  %v3182_v4 = vrot.slane %v3172_v2, %v4609_v24  ;;  %v3189_v14 = vrot.slane %v3173_v44, %v4609_v24 }
 0x34b   :  { %v3196_v34 = vrot.slane %v3174_v5, %v4609_v24  ;;  %v1815_v11 = vrot.slane %v4950_v39, %v4590_v16  ;;  %v1819_v17 = vrot.slane %v4950_v39, %v4593_v10  ;;  %v1823_v22 = vrot.slane %v4950_v39, %v4596_v19 }
 0x34c   :  { %v3073_v54 = vcombine.low %v3065_v3, %v3072_v7  ;;  %v3203_v38 = vrot.slane %v3175_v25, %v4609_v24  ;;  %v3204_v26 = vcombine.low %v3182_v4, %v3189_v14  ;;  %v1827_v30 = vrot.slane %v4950_v39, %v4599_v20 }
 0x34d   :  { %v1831_v31 = vrot.slane %v4950_v39, %v4602_v21  ;;  %v1835_v33 = vrot.slane %v4950_v39, %v4606_v23  ;;  %v3270_v47 = vcombine.low %v1807_v46, %v1811_v6  ;;  %v3271_v37 = vcombine.low %v1815_v11, %v1819_v17 }
 0x34e   :  { %3628 = vperm.xlu1 %4051, %v3073_v54   ;;  %v3205_v49 = vcombine.low %v3196_v34, %v3203_v38  ;;  %v3212_v42 = vrot.slane %v3204_v26, %v4609_v24  ;;  %v3272_v8 = vcombine.low %v1823_v22, %v1827_v30  ;;  %v1423_v45 = vrot.slane %v4705_v27, %v4584_v15 }
 0x34f   :  { %v3273_v48 = vcombine.low %v1831_v31, %v1835_v33  ;;  %v3280_v51 = vrot.slane %v3270_v47, %v4609_v24  ;;  %v3287_v32 = vrot.slane %v3271_v37, %v4609_v24  ;;  %v1427_v52 = vrot.slane %v4705_v27, %v4587_v18 }
 0x350   :  { %v3219_v39 = vrot.slane %v3205_v49, %v4609_v24  ;;  %v3294_v55 = vrot.slane %v3272_v8, %v4609_v24  ;;  %v1431_v36 = vrot.slane %v4705_v27, %v4590_v16  ;;  %v1435_v59 = vrot.slane %v4705_v27, %v4593_v10 }
 0x351   :  { %v3301_v56 = vrot.slane %v3273_v48, %v4609_v24  ;;  %v3302_v13 = vcombine.low %v3280_v51, %v3287_v32  ;;  %v1439_v57 = vrot.slane %v4705_v27, %v4596_v19  ;;  %v1443_v60 = vrot.slane %v4705_v27, %v4599_v20 }
 0x352   :  { %v3220_v61 = vcombine.low %v3212_v42, %v3219_v39  ;;  %v1447_v62 = vrot.slane %v4705_v27, %v4602_v21  ;;  %v1451_v58 = vrot.slane %v4705_v27, %v4606_v23  ;;  %v2682_v63 = vcombine.low %v1423_v45, %v1427_v52 }
 0x353   :  { %v3303_v0 = vcombine.low %v3294_v55, %v3301_v56  ;;  %v3310_v29 = vrot.slane %v3302_v13, %v4609_v24  ;;  %v2683_v1 = vcombine.low %v1431_v36, %v1435_v59  ;;  %v2684_v2 = vcombine.low %v1439_v57, %v1443_v60 }
 0x354   :  { %3637 = vperm.xlu0 %4052, %v3220_v61   ;;  %v2685_v44 = vcombine.low %v1447_v62, %v1451_v58  ;;  %v2692_v3 = vrot.slane %v2682_v63, %v4609_v24  ;;  %v1839_v5 = vrot.slane %v5005_v41, %v4584_v15  ;;  %v1843_v46 = vrot.slane %v5005_v41, %v4587_v18 }
 0x355   :  { %v3317_v6 = vrot.slane %v3303_v0, %v4609_v24  ;;  %v2699_v27 = vrot.slane %v2683_v1, %v4609_v24  ;;  %v2706_v7 = vrot.slane %v2684_v2, %v4609_v24  ;;  %v1847_v25 = vrot.slane %v5005_v41, %v4590_v16 }
 0x356   :  { %v2713_v4 = vrot.slane %v2685_v44, %v4609_v24  ;;  %v1851_v14 = vrot.slane %v5005_v41, %v4593_v10  ;;  %v1855_v34 = vrot.slane %v5005_v41, %v4596_v19  ;;  %v1859_v11 = vrot.slane %v5005_v41, %v4599_v20 }
 0x357   :  { %v3318_v17 = vcombine.low %v3310_v29, %v3317_v6  ;;  %v2714_v22 = vcombine.low %v2692_v3, %v2699_v27  ;;  %v1863_v54 = vrot.slane %v5005_v41, %v4602_v21  ;;  %v1867_v38 = vrot.slane %v5005_v41, %v4606_v23 }
 0x358   :  { %v2715_v26 = vcombine.low %v2706_v7, %v2713_v4  ;;  %v3319_v30 = vcombine.low %v1839_v5, %v1843_v46  ;;  %v3320_v31 = vcombine.low %v1847_v25, %v1851_v14  ;;  %v3321_v33 = vcombine.low %v1855_v34, %v1859_v11 }
 0x359   :  { %3643 = vperm.xlu1 %4051, %v3318_v17   ;;  %v2722_v47 = vrot.slane %v2714_v22, %v4609_v24  ;;  %v3322_v37 = vcombine.low %v1863_v54, %v1867_v38  ;;  %v1455_v49 = vrot.slane %v4731_v50, %v4584_v15  ;;  %v1459_v42 = vrot.slane %v4731_v50, %v4587_v18 }
 0x35a   :  { %v2729_v8 = vrot.slane %v2715_v26, %v4609_v24  ;;  %v3329_v45 = vrot.slane %v3319_v30, %v4609_v24  ;;  %v3336_v41 = vrot.slane %v3320_v31, %v4609_v24  ;;  %v3343_v48 = vrot.slane %v3321_v33, %v4609_v24 }
 0x35b   :  { %v3350_v51 = vrot.slane %v3322_v37, %v4609_v24  ;;  %v1463_v32 = vrot.slane %v4731_v50, %v4590_v16  ;;  %v1467_v52 = vrot.slane %v4731_v50, %v4593_v10  ;;  %v1471_v39 = vrot.slane %v4731_v50, %v4596_v19 }
 0x35c   :  { %v2730_v55 = vcombine.low %v2722_v47, %v2729_v8  ;;  %v3351_v36 = vcombine.low %v3329_v45, %v3336_v41  ;;  %v1475_v59 = vrot.slane %v4731_v50, %v4599_v20  ;;  %v1479_v56 = vrot.slane %v4731_v50, %v4602_v21 }
 0x35d   :  { %v3352_v13 = vcombine.low %v3343_v48, %v3350_v51  ;;  %v1483_v57 = vrot.slane %v4731_v50, %v4606_v23  ;;  %v2731_v60 = vcombine.low %v1455_v49, %v1459_v42  ;;  %v2732_v61 = vcombine.low %v1463_v32, %v1467_v52 }
 0x35e   :  { %3607 = vperm.xlu0 %4052, %v2730_v55   ;;  %v3359_v62 = vrot.slane %v3351_v36, %v4609_v24  ;;  %v2733_v58 = vcombine.low %v1471_v39, %v1475_v59  ;;  %v1775_v63 = vrot.slane %v5055_v43, %v4584_v15  ;;  %v1779_v0 = vrot.slane %v5055_v43, %v4587_v18 }
 0x35f   :  { %v3366_v29 = vrot.slane %v3352_v13, %v4609_v24  ;;  %v2734_v1 = vcombine.low %v1479_v56, %v1483_v57  ;;  %v2741_v2 = vrot.slane %v2731_v60, %v4609_v24  ;;  %v2748_v44 = vrot.slane %v2732_v61, %v4609_v24 }
 0x360   :  { %v2755_v50 = vrot.slane %v2733_v58, %v4609_v24  ;;  %v1783_v3 = vrot.slane %v5055_v43, %v4590_v16  ;;  %v1787_v5 = vrot.slane %v5055_v43, %v4593_v10  ;;  %v1791_v46 = vrot.slane %v5055_v43, %v4596_v19 }
 0x361   :  { %v3367_v6 = vcombine.low %v3359_v62, %v3366_v29  ;;  %v2762_v27 = vrot.slane %v2734_v1, %v4609_v24  ;;  %v2763_v7 = vcombine.low %v2741_v2, %v2748_v44  ;;  %v1795_v25 = vrot.slane %v5055_v43, %v4599_v20 }
 0x362   :  { %v1799_v4 = vrot.slane %v5055_v43, %v4602_v21  ;;  %v1803_v14 = vrot.slane %v5055_v43, %v4606_v23  ;;  %v3221_v34 = vcombine.low %v1775_v63, %v1779_v0  ;;  %v3222_v11 = vcombine.low %v1783_v3, %v1787_v5 }
 0x363   :  { %3646 = vperm.xlu1 %4051, %v3367_v6   ;;  %v2764_v17 = vcombine.low %v2755_v50, %v2762_v27  ;;  %v2771_v22 = vrot.slane %v2763_v7, %v4609_v24  ;;  %v3223_v54 = vcombine.low %v1791_v46, %v1795_v25  ;;  %v1935_v38 = vrot.slane %v5050_v40, %v4584_v15 }
 0x364   :  { %v3224_v26 = vcombine.low %v1799_v4, %v1803_v14  ;;  %v3231_v30 = vrot.slane %v3221_v34, %v4609_v24  ;;  %v3238_v31 = vrot.slane %v3222_v11, %v4609_v24  ;;  %v1939_v33 = vrot.slane %v5050_v40, %v4587_v18 }
 0x365   :  { %v2778_v43 = vrot.slane %v2764_v17, %v4609_v24  ;;  %v3245_v47 = vrot.slane %v3223_v54, %v4609_v24  ;;  %v1943_v37 = vrot.slane %v5050_v40, %v4590_v16  ;;  %v1947_v49 = vrot.slane %v5050_v40, %v4593_v10 }
 0x366   :  { %v3252_v42 = vrot.slane %v3224_v26, %v4609_v24  ;;  %v3253_v8 = vcombine.low %v3231_v30, %v3238_v31  ;;  %v1951_v45 = vrot.slane %v5050_v40, %v4596_v19  ;;  %v1955_v41 = vrot.slane %v5050_v40, %v4599_v20 }
 0x367   :  { %v2779_v48 = vcombine.low %v2771_v22, %v2778_v43  ;;  %v1959_v51 = vrot.slane %v5050_v40, %v4602_v21  ;;  %v1963_v32 = vrot.slane %v5050_v40, %v4606_v23  ;;  %v3466_v52 = vcombine.low %v1935_v38, %v1939_v33 }
 0x368   :  { %v3254_v39 = vcombine.low %v3245_v47, %v3252_v42  ;;  %v3261_v55 = vrot.slane %v3253_v8, %v4609_v24  ;;  %v3467_v36 = vcombine.low %v1943_v37, %v1947_v49  ;;  %v3468_v59 = vcombine.low %v1951_v45, %v1955_v41 }
 0x369   :  { %3610 = vperm.xlu0 %4052, %v2779_v48   ;;  %v3469_v56 = vcombine.low %v1959_v51, %v1963_v32  ;;  %v3476_v13 = vrot.slane %v3466_v52, %v4609_v24  ;;  %v1871_v57 = vrot.slane %v5100_v35, %v4584_v15  ;;  %v1875_v60 = vrot.slane %v5100_v35, %v4587_v18 }
 0x36a   :  { %v3268_v61 = vrot.slane %v3254_v39, %v4609_v24  ;;  %v3483_v40 = vrot.slane %v3467_v36, %v4609_v24  ;;  %v3490_v62 = vrot.slane %v3468_v59, %v4609_v24  ;;  %v1879_v58 = vrot.slane %v5100_v35, %v4590_v16 }
 0x36b   :  { %v3497_v63 = vrot.slane %v3469_v56, %v4609_v24  ;;  %v1883_v0 = vrot.slane %v5100_v35, %v4593_v10  ;;  %v1887_v29 = vrot.slane %v5100_v35, %v4596_v19  ;;  %v1891_v1 = vrot.slane %v5100_v35, %v4599_v20 }
 0x36c   :  { %v3269_v2 = vcombine.low %v3261_v55, %v3268_v61  ;;  %v3498_v44 = vcombine.low %v3476_v13, %v3483_v40  ;;  %v1895_v50 = vrot.slane %v5100_v35, %v4602_v21  ;;  %v1899_v3 = vrot.slane %v5100_v35, %v4606_v23 }
 0x36d   :  { %v3499_v5 = vcombine.low %v3490_v62, %v3497_v63  ;;  %v3368_v46 = vcombine.low %v1871_v57, %v1875_v60  ;;  %v3369_v6 = vcombine.low %v1879_v58, %v1883_v0  ;;  %v3370_v27 = vcombine.low %v1887_v29, %v1891_v1 }
 0x36e   :  { %3640 = vperm.xlu1 %4051, %v3269_v2   ;;  %v3506_v7 = vrot.slane %v3498_v44, %v4609_v24  ;;  %v3371_v25 = vcombine.low %v1895_v50, %v1899_v3  ;;  %v1903_v4 = vrot.slane %v5105_v53, %v4584_v15  ;;  %v1907_v14 = vrot.slane %v5105_v53, %v4587_v18  ;;  %v3572_v50 = vpop.permute.xlu1 %3571 }
 0x36f   :  { %v3513_v34 = vrot.slane %v3499_v5, %v4609_v24  ;;  %v3378_v11 = vrot.slane %v3368_v46, %v4609_v24  ;;  %v3385_v35 = vrot.slane %v3369_v6, %v4609_v24  ;;  %v3392_v17 = vrot.slane %v3370_v27, %v4609_v24 }
 0x370   :  { %v3399_v22 = vrot.slane %v3371_v25, %v4609_v24  ;;  %v1911_v54 = vrot.slane %v5105_v53, %v4590_v16  ;;  %v1915_v38 = vrot.slane %v5105_v53, %v4593_v10  ;;  %v1919_v26 = vrot.slane %v5105_v53, %v4596_v19  ;;  %v3569_v25 = vpop.permute.xlu0 %3568 }
 0x371   :  { %v3514_v30 = vcombine.low %v3506_v7, %v3513_v34  ;;  %v3400_v31 = vcombine.low %v3378_v11, %v3385_v35  ;;  %v1923_v33 = vrot.slane %v5105_v53, %v4599_v20  ;;  %v1927_v43 = vrot.slane %v5105_v53, %v4602_v21 }
 0x372   :  { %v3401_v47 = vcombine.low %v3392_v17, %v3399_v22  ;;  %v1931_v37 = vrot.slane %v5105_v53, %v4606_v23  ;;  %v3417_v49 = vcombine.low %v1903_v4, %v1907_v14  ;;  %v3418_v42 = vcombine.low %v1911_v54, %v1915_v38  ;;  %v3566_v3 = vpop.permute.xlu1 %3565 }
 0x373   :  { %3655 = vperm.xlu1 %4051, %v3514_v30   ;;  %v3408_v8 = vrot.slane %v3400_v31, %v4609_v24  ;;  %v3419_v45 = vcombine.low %v1919_v26, %v1923_v33  ;;  %v1967_v41 = vrot.slane %v5150_v28, %v4584_v15  ;;  %v1971_v48 = vrot.slane %v5150_v28, %v4587_v18 }
 0x374   :  { %v3415_v51 = vrot.slane %v3401_v47, %v4609_v24  ;;  %v3420_v32 = vcombine.low %v1927_v43, %v1931_v37  ;;  %v3427_v52 = vrot.slane %v3417_v49, %v4609_v24  ;;  %v3434_v39 = vrot.slane %v3418_v42, %v4609_v24 }
 0x375   :  { %v3441_v53 = vrot.slane %v3419_v45, %v4609_v24  ;;  %v1975_v55 = vrot.slane %v5150_v28, %v4590_v16  ;;  %v1979_v36 = vrot.slane %v5150_v28, %v4593_v10  ;;  %v1983_v15 = vrot.slane %v5150_v28, %v4596_v19  ;;  %v5386_v4 = vpop.permute.xlu0 %3595 }
 0x376   :  { %v3416_v59 = vcombine.low %v3408_v8, %v3415_v51  ;;  %v3448_v18 = vrot.slane %v3420_v32, %v4609_v24  ;;  %v3449_v56 = vcombine.low %v3427_v52, %v3434_v39  ;;  %v1987_v13 = vrot.slane %v5150_v28, %v4599_v20  ;;  %v3575_v5 = vpop.permute.xlu1 %3574 }
 0x377   :  { %v1991_v57 = vrot.slane %v5150_v28, %v4602_v21  ;;  %v1995_v60 = vrot.slane %v5150_v28, %v4606_v23  ;;  %v3515_v16 = vcombine.low %v1967_v41, %v1971_v48  ;;  %v3516_v61 = vcombine.low %v1975_v55, %v1979_v36 }
 0x378   :  { %3649 = vperm.xlu1 %4051, %v3416_v59   ;;  %v3450_v10 = vcombine.low %v3441_v53, %v3448_v18  ;;  %v3457_v40 = vrot.slane %v3449_v56, %v4609_v24  ;;  %v3517_v19 = vcombine.low %v1983_v15, %v1987_v13  ;;  %v5401_v30 = vand.u32 127, %v972_v9 }
 0x379   :  { %v3518_v62 = vcombine.low %v1991_v57, %v1995_v60  ;;  %v3525_v58 = vrot.slane %v3515_v16, %v4609_v24  ;;  %v3532_v63 = vrot.slane %v3516_v61, %v4609_v24 }
 0x37a   :  { %v3464_v20 = vrot.slane %v3450_v10, %v4609_v24  ;;  %v3539_v0 = vrot.slane %v3517_v19, %v4609_v24  ;;  %v5380_v46 = vpop.permute.xlu1 %3583  ;;  %v3666_v33 = vadd.s32 4294967288, %v5401_v30  ;;  %v3664_v37 = vsub.s32 %v5401_v30, %v4576_v12 }
 0x37b   :  { %v3546_v21 = vrot.slane %v3518_v62, %v4609_v24  ;;  %v3547_v29 = vcombine.low %v3525_v58, %v3532_v63  ;;  %v3680_v49 = vadd.s32 4294967272, %v5401_v30  ;;  %v3673_v8 = vadd.s32 4294967280, %v5401_v30 }
 0x37c   :  { %v3465_v23 = vcombine.low %v3457_v40, %v3464_v20  ;;  %v3669_v47 = vsub.s32 %v3666_v33, %v4576_v12  ;;  %v3687_v45 = vadd.s32 4294967264, %v5401_v30  ;;  %v3693_v41 = vadd.s32 4294967256, %v5401_v30 }
 0x37d   :  { %v3548_v28 = vcombine.low %v3539_v0, %v3546_v21  ;;  %v3555_v1 = vrot.slane %v3547_v29, %v4609_v24  ;;  %v3665_v39 = vrot.slane %v3566_v3, %v3664_v37  ;;  %v3683_v53 = vsub.s32 %v3680_v49, %v4576_v12 }
 0x37e   :  { %3652 = vperm.xlu1 %4051, %v3465_v23   ;;  %v3578_v6 = vpop.permute.xlu1 %3577  ;;  %v3670_v52 = vrot.slane %v3569_v25, %v3669_v47  ;;  %v3676_v55 = vsub.s32 %v3673_v8, %v4576_v12  ;;  %v3690_v36 = vsub.s32 %v3687_v45, %v4576_v12  ;;  %v3696_v15 = vsub.s32 %v3693_v41, %v4576_v12 }
 0x37f   :  { %v3562_v2 = vrot.slane %v3548_v28, %v4609_v24  ;;  %v3700_v56 = vadd.s32 4294967248, %v5401_v30  ;;  %v3684_v60 = vrot.slane %v3575_v5, %v3683_v53  ;;  %v3707_v62 = vadd.s32 4294967240, %v5401_v30 }
 0x380   :  { %v3672_v57 = vsel %vm3671_vm3, %v3670_v52, %v3665_v39  ;;  %v3677_v61 = vrot.slane %v3572_v50, %v3676_v55  ;;  %v3691_v10 = vrot.slane %v3578_v6, %v3690_v36  ;;  %v3714_v21 = vadd.s32 4294967232, %v5401_v30 }
 0x381   :  { %v3563_v44 = vcombine.low %v3555_v1, %v3562_v2  ;;  %v3703_v0 = vsub.s32 %v3700_v56, %v4576_v12  ;;  %v3721_v23 = vadd.s32 4294967224, %v5401_v30  ;;  %v3710_v50 = vsub.s32 %v3707_v62, %v4576_v12 }
 0x382   :  { %v5382_v27 = vpop.permute.xlu1 %3586  ;;  %v3679_v20 = vsel %vm3678_vm4, %v3677_v61, %v3672_v57  ;;  %v3742_v39 = vadd.s32 4294967200, %v5401_v30  ;;  %v3763_v56 = vadd.s32 4294967176, %v5401_v30 }
 0x383   :  { %3658 = vperm.xlu1 %4051, %v3563_v44   ;;  %v3686_v29 = vsel %vm3685_vm5, %v3684_v60, %v3679_v20  ;;  %v3704_v6 = vrot.slane %v5380_v46, %v3703_v0  ;;  %v3724_v25 = vsub.s32 %v3721_v23, %v4576_v12  ;;  %v3711_v33 = vrot.slane %v5382_v27, %v3710_v50 }
 0x384   :  { %v3692_v2 = vsel %vm209_vm1, %v3691_v10, %v3686_v29 }
 0x385   :  { %v5390_v34 = vpop.permute.xlu0 %3598 }
 0x38b   :  { %v5384_v7 = vpop.permute.xlu1 %3580 }
 0x38c   :  { %v3697_v58 = vrot.slane %v5384_v7, %v3696_v15  ;;  %v3717_v7 = vsub.s32 %v3714_v21, %v4576_v12 }
 0x38e   :  { %v3699_v3 = vsel %vm3698_vm6, %v3697_v58, %v3692_v2  ;;  %v3766_v58 = vsub.s32 %v3763_v56, %v4576_v12 }
 0x391   :  { %v5388_v14 = vpop.permute.xlu1 %3589 }
 0x396   :  { %v5394_v35 = vpop.permute.xlu0 %3601 }
 0x39c   :  { %v5392_v11 = vpop.permute.xlu1 %3592 }
 0x39d   :  { %v3725_v45 = vrot.slane %v5392_v11, %v3724_v25  ;;  %v3749_v11 = vadd.s32 4294967192, %v5401_v30 }
 0x3a1   :  { %v5396_v22 = vpop.permute.xlu0 %3604 }
 0x3a7   :  { %v3620_v38 = vpop.permute.xlu0 %3619 }
 0x3a8   :  { %v3782_v13 = vrot.slane %v3620_v38, %v3676_v55  ;;  %v3706_v38 = vsel %vm3705_vm7, %v3704_v6, %v3699_v3 }
 0x3a9   :  { %v3713_v46 = vsel %vm3712_vm8, %v3711_v33, %v3706_v38 }
 0x3ac   :  { %v3623_v17 = vpop.permute.xlu1 %3622 }
 0x3ad   :  { %v3787_v63 = vrot.slane %v3623_v17, %v3683_v53 }
 0x3b2   :  { %v3614_v31 = vpop.permute.xlu0 %3613 }
 0x3b3   :  { %v3773_v51 = vrot.slane %v3614_v31, %v3664_v37  ;;  %v3718_v37 = vrot.slane %v5388_v14, %v3717_v7 }
 0x3b5   :  { %v3720_v27 = vsel %vm3719_vm9, %v3718_v37, %v3713_v46 }
 0x3b6   :  { %v3727_v53 = vsel %vm3726_vm10, %v3725_v45, %v3720_v27 }
 0x3b7   :  { %v3617_v54 = vpop.permute.xlu1 %3616 }
 0x3b8   :  { %v3777_v48 = vrot.slane %v3617_v54, %v3669_v47  ;;  %v3728_v54 = vadd.s32 4294967216, %v5401_v30  ;;  %v3735_v47 = vadd.s32 4294967208, %v5401_v30 }
 0x3ba   :  { %v3778_v59 = vsel %vm3671_vm3, %v3777_v48, %v3773_v51  ;;  %v3731_v48 = vsub.s32 %v3728_v54, %v4576_v12  ;;  %v3738_v14 = vsub.s32 %v3735_v47, %v4576_v12 }
 0x3bb   :  { %v3783_v40 = vsel %vm3678_vm4, %v3782_v13, %v3778_v59  ;;  %v3745_v13 = vsub.s32 %v3742_v39, %v4576_v12 }
 0x3bc   :  { %v3788_v1 = vsel %vm3685_vm5, %v3787_v63, %v3783_v40  ;;  %v3739_v61 = vrot.slane %v5390_v34, %v3738_v14 }
 0x3bd   :  { %v3632_v42 = vpop.permute.xlu0 %3631  ;;  %v3746_v20 = vrot.slane %v5394_v35, %v3745_v13 }
 0x3be   :  { %v3802_v31 = vrot.slane %v3632_v42, %v3703_v0 }
 0x3c2   :  { %v5398_v26 = vpop.permute.xlu1 %3634 }
 0x3c3   :  { %v3807_v41 = vrot.slane %v5398_v26, %v3710_v50 }
 0x3c8   :  { %v3626_v18 = vpop.permute.xlu0 %3625 }
 0x3c9   :  { %v3792_v19 = vrot.slane %v3626_v18, %v3690_v36  ;;  %v3732_v36 = vrot.slane %v5386_v4, %v3731_v48  ;;  %v3752_v4 = vsub.s32 %v3749_v11, %v4576_v12 }
 0x3cb   :  { %v3793_v44 = vsel %vm209_vm1, %v3792_v19, %v3788_v1  ;;  %v3734_v57 = vsel %vm3733_vm11, %v3732_v36, %v3727_v53  ;;  %vm3867_vm1 = vcmp.lt.s32.totalorder %v972_v9, 256 }
 0x3cc   :  { %v3741_v62 = vsel %vm3740_vm12, %v3739_v61, %v3734_v57 }
 0x3cd   :  { %v3629_v43 = vpop.permute.xlu1 %3628  ;;  %v3748_v34 = vsel %vm3747_vm13, %v3746_v20, %v3741_v62 }
 0x3ce   :  { %v3797_v28 = vrot.slane %v3629_v43, %v3696_v15  ;;  %v3756_v15 = vadd.s32 4294967184, %v5401_v30 }
 0x3d0   :  { %v3798_v17 = vsel %vm3698_vm6, %v3797_v28, %v3793_v44  ;;  %v3759_v10 = vsub.s32 %v3756_v15, %v4576_v12  ;;  %v3753_v28 = vrot.slane %v5396_v22, %v3752_v4 }
 0x3d1   :  { %v3803_v49 = vsel %vm3705_vm7, %v3802_v31, %v3798_v17 }
 0x3d2   :  { %v3808_v42 = vsel %vm3712_vm8, %v3807_v41, %v3803_v49  ;;  %v3755_v50 = vsel %vm3754_vm14, %v3753_v28, %v3748_v34 }
 0x3d3   :  { %v3638_v43 = vpop.permute.xlu0 %3637 }
 0x3d4   :  { %v3812_v51 = vrot.slane %v3638_v43, %v3717_v7 }
 0x3d6   :  { %v3813_v26 = vsel %vm3719_vm9, %v3812_v51, %v3808_v42 }
 0x3d8   :  { %v5411_v32 = vpop.permute.xlu1 %3643 }
 0x3d9   :  { %v3822_v60 = vrot.slane %v5411_v32, %v3731_v48 }
 0x3dd   :  { %v3608_v59 = vpop.permute.xlu0 %3607 }
 0x3de   :  { %v3760_v29 = vrot.slane %v3608_v59, %v3759_v10 }
 0x3e0   :  { %v3762_v3 = vsel %vm3761_vm15, %v3760_v29, %v3755_v50 }
 0x3e2   :  { %v5418_v16 = vpop.permute.xlu1 %3646 }
 0x3e3   :  { %v3827_v30 = vrot.slane %v5418_v16, %v3738_v14 }
 0x3e8   :  { %v3611_v0 = vpop.permute.xlu0 %3610 }
 0x3e9   :  { %v3767_v1 = vrot.slane %v3611_v0, %v3766_v58 }
 0x3eb   :  { %v3769_v35 = vsel %vm3768_vm0, %v3767_v1, %v3762_v3 }
 0x3ed   :  { %v3641_v5 = vpop.permute.xlu1 %3640 }
 0x3ee   :  { %v3817_v52 = vrot.slane %v3641_v5, %v3724_v25 }
 0x3f0   :  { %v3818_v18 = vsel %vm3726_vm10, %v3817_v52, %v3813_v26 }
 0x3f1   :  { %v3823_v40 = vsel %vm3733_vm11, %v3822_v60, %v3818_v18 }
 0x3f2   :  { %v3656_v8 = vpop.permute.xlu1 %3655  ;;  %v3828_v21 = vsel %vm3740_vm12, %v3827_v30, %v3823_v40 }
 0x3f3   :  { %v3842_v44 = vrot.slane %v3656_v8, %v3759_v10 }
 0x3f7   :  { %v3650_v55 = vpop.permute.xlu1 %3649 }
 0x3f8   :  { %v3832_v19 = vrot.slane %v3650_v55, %v3745_v13 }
 0x3fa   :  { %v3833_v23 = vsel %vm3747_vm13, %v3832_v19, %v3828_v21 }
 0x3fd   :  { %v3653_v63 = vpop.permute.xlu1 %3652 }
 0x3fe   :  { %v3837_v32 = vrot.slane %v3653_v63, %v3752_v4 }
 0x400   :  { %v3838_v2 = vsel %vm3754_vm14, %v3837_v32, %v3833_v23 }
 0x401   :  { %v3843_v5 = vsel %vm3761_vm15, %v3842_v44, %v3838_v2 }
 0x402   :  { %v3659_v16 = vpop.permute.xlu1 %3658 }
 0x403   :  { %v3847_v12 = vrot.slane %v3659_v16, %v3766_v58 }
 0x405   :  { %v3848_v6 = vsel %vm3768_vm0, %v3847_v12, %v3843_v5 }
 0x406   :  { %v3849_v7 = vcombine.low %v3769_v35, %v3848_v6 }
 0x408   :  { %v3856_v25 = vrot.slane %v3849_v7, %v4609_v24 }
 0x40a   :  { %v3863_v22 = vrot.slane %v3856_v25, %v4609_v24 }
 0x40c   :  { %3869 = vst.msk [vmem:[#allocation4] sm:$0x3] %vm3867_vm1, %v3863_v22 }
 0x40d   :  { %4080 = shalt.err (!%p4077_p4)
}
 0x40e   :  { %s4081_s18 = scalar_lea.hbm %s5482_s8, 32 }
 0x40f   :  { %p4082_p5 = scmp.ne.s32.totalorder %s5482_s8, %s4081_s18  ;;  %p4085_p6 = scmp.lt.u32.totalorder %s4081_s18, %s5482_s8 }
 0x411   :  { %p4087_p7 = pnand %p4085_p6, %p4082_p5 }
 0x413   :  { %4090 = shalt.err (!%p4087_p7)
}
 0x414   :  { %3879 = dma.vmem_to_hbm [thread:$0]  %s3877_s14, 32, %s5482_s8, [#allocation5]  }
 0x415   :  { %4091 = dma.done.wait [#allocation5], 32  }
 0x416   :  { %4092 = vsyncadd [#allocation5], 4294967264 }
 0x417   :  { %3883 = vsyncpa [#allocation5], 1 }

</bundles_post_ra>
